<compile_context>
chip_gen: v5e
topology: v5e:2x2
jax: 0.10.0
libtpu: 0.0.40
codegen_flags: <defaults>
</compile_context>

<pallas_src>
import functools
import math

import jax
import jax.numpy as jnp
from jax.experimental import pallas as pl
from jax.experimental.pallas import tpu as pltpu


# --------------------------------------------------------------------------------------
# Kernel: 3x3 same-conv (stride 1) + bias + ReLU + fused PixelShuffle store, one H-band
# of one image (NHWC, width-im2col'd input, channel-permuted weights).
# --------------------------------------------------------------------------------------
def _conv3x3_relu_ps_kernel(x_ref, w_ref, b_ref, o_ref, acc_ref, *,
                            band_rows, width, k, cout, r, rc):
    # x_ref : (1, 1, band_rows + 2, W, k*Cin)   H-halo'd, width-im2col'd input band
    # w_ref : (k, k*Cin, Cout)                  per-kh weight slab, Cout order = (a, b, c)
    # b_ref : (1, Cout)                         f32 bias, same channel order
    # o_ref : (1, 1, band_rows, r, W, r*C)      pixel-shuffled output block
    # acc_ref: (band_rows*W, Cout) f32 scratch accumulator
    m = band_rows * width

    def tap(kh):
        patch = x_ref[0, 0, kh:kh + band_rows, :, :]           # (hb, W, k*Cin) free slice
        patch2d = patch.reshape(m, patch.shape[-1])            # leading-dim merge only
        return jnp.dot(patch2d, w_ref[kh],                     # fat k*Cin contraction
                       preferred_element_type=jnp.float32)

    acc_ref[...] = tap(0)
    for kh in range(1, k):
        acc_ref[...] += tap(kh)

    y = jnp.maximum(acc_ref[...] + b_ref[...], 0.0)            # f32 bias + ReLU epilogue
    y = y.reshape(band_rows, width, cout)                      # (hb, W, Cout); W % 8 == 0

    # Fused PixelShuffle: r lane-contiguous slab stores.  Channel block a*rC:(a+1)*rC of
    # the conv output is exactly the sub-row `a` of the upsampled image, already in
    # (w, b, c) lane order, so the output array is in final NHWC order (up to a free
    # wrapper reshape).
    for a in range(r):
        o_ref[0, 0, :, a, :, :] = y[:, :, a * rc:(a + 1) * rc].astype(o_ref.dtype)


# --------------------------------------------------------------------------------------
# VMEM budgeting / band-size choice.
# --------------------------------------------------------------------------------------
def _default_vmem_limit_bytes():
    cap = None
    try:
        cap = getattr(pltpu.get_tpu_info(), "vmem_capacity_bytes", None)
    except Exception:
        cap = None
    if not cap:
        cap = 64 * 1024 * 1024                 # conservative: v7x per-TC VMEM
    # ~96 MiB on 128-MiB parts (v5e/v6e), ~48 MiB on 64-MiB parts (v7x).
    return min(int(cap * 3 // 4), 100 * 1024 * 1024)


def _choose_band_rows(N, H, Wp, kcin, cout, in_item, out_item, w_bytes, budget_bytes):
    def vmem_bytes(hb):
        band_in = (hb + 2) * Wp * kcin * in_item          # input band
        band_out = hb * Wp * cout * out_item              # output band
        acc = hb * Wp * cout * 4                          # f32 accumulator scratch
        # double-buffered in/out blocks + weights + ~2 MiB compiler scratch margin
        return 2 * band_in + 2 * band_out + acc + 2 * w_bytes + (2 << 20)

    hb = max(H, 1)
    while hb > 1 and vmem_bytes(hb) > budget_bytes:
        hb = (hb + 1) // 2
    nb = -(-H // hb)
    if H > 1:
        if N * nb < 2:                                     # give megacore >= 2 work items
            nb = 2
        if N == 1 and nb % 2 == 1 and nb < H:              # even work count (v7x: 2 TCs)
            nb += 1
    hb = -(-H // nb)
    nb = -(-H // hb)
    return hb, nb


# --------------------------------------------------------------------------------------
# One conv + ReLU + PixelShuffle(r) stage on an NHWC tensor.
# --------------------------------------------------------------------------------------
def conv3x3_relu_pixelshuffle_nhwc(x_nhwc, weight, bias, r, *,
                                   compute_dtype=jnp.bfloat16, out_dtype=None,
                                   band_rows=None, vmem_limit_bytes=None):
    """x_nhwc: (N, H, W, Cin); weight: (r*r*C, Cin, 3, 3) OIHW; bias: (r*r*C,).
    Returns the pixel-shuffled result (N, H*r, W*r, C) in NHWC."""
    N, H, W, Cin = x_nhwc.shape
    Cout, Cin_w, K, K2 = weight.shape
    assert Cin_w == Cin and K == 3 and K2 == 3 and Cout % (r * r) == 0
    C = Cout // (r * r)
    rC = r * C
    kcin = K * Cin

    cdt = jnp.dtype(compute_dtype if compute_dtype is not None else x_nhwc.dtype)
    odt = jnp.dtype(out_dtype if out_dtype is not None else x_nhwc.dtype)
    in_item, out_item = cdt.itemsize, odt.itemsize

    if vmem_limit_bytes is None:
        vmem_limit_bytes = _default_vmem_limit_bytes()

    Wp = -(-W // 8) * 8                        # sublane-friendly width (cropped after)
    w_bytes = K * kcin * Cout * in_item
    if band_rows is None:
        hb, nb = _choose_band_rows(N, H, Wp, kcin, Cout, in_item, out_item, w_bytes,
                                   budget_bytes=(vmem_limit_bytes * 3) // 4)
    else:
        hb = band_rows
        nb = -(-H // hb)
    Hp = hb * nb

    # ---- wrapper-side layout prep (plain JAX / XLA), in the (bf16) compute dtype ----
    # Zero padding: 1 halo row/col + round-up padding; identical to the conv's zero halo.
    x_pad = jnp.pad(x_nhwc.astype(cdt),
                    ((0, 0), (1, 1 + Hp - H), (1, 1 + Wp - W), (0, 0)))
    # width im2col: x_col[n, h, w, kw*Cin + ci] = x_pad[n, h, w + kw, ci]
    x_col = jnp.concatenate([x_pad[:, :, kw:kw + Wp, :] for kw in range(K)], axis=-1)
    # H banding with a 1-row halo on each side.
    x_band = jnp.stack([x_col[:, b * hb: b * hb + hb + 2] for b in range(nb)], axis=1)

    # weight (c*r*r + a*r + b, ci, kh, kw)  ->  (kh, kw*Cin + ci, a*rC + b*C + c)
    w6 = weight.reshape(C, r, r, Cin, K, K)
    w_tap = jnp.transpose(w6, (4, 5, 3, 1, 2, 0)).reshape(K, kcin, Cout).astype(cdt)
    b2d = jnp.transpose(bias.reshape(C, r, r), (1, 2, 0)).reshape(1, Cout).astype(jnp.float32)

    kernel = functools.partial(_conv3x3_relu_ps_kernel, band_rows=hb, width=Wp,
                               k=K, cout=Cout, r=r, rc=rC)

    flops = 2 * N * Hp * Wp * Cout * K * K * Cin
    bytes_accessed = (N * nb * (hb + 2) * Wp * kcin * in_item
                      + K * kcin * Cout * in_item + Cout * 4
                      + N * Hp * Wp * Cout * out_item)

    out6 = pl.pallas_call(
        kernel,
        out_shape=jax.ShapeDtypeStruct((N, nb, hb, r, Wp, rC), odt),
        grid_spec=pltpu.PrefetchScalarGridSpec(
            num_scalar_prefetch=0,
            grid=(N, nb),
            in_specs=[
                pl.BlockSpec((1, 1, hb + 2, Wp, kcin), lambda n, b: (n, b, 0, 0, 0)),
                pl.BlockSpec((K, kcin, Cout), lambda n, b: (0, 0, 0)),
                pl.BlockSpec((1, Cout), lambda n, b: (0, 0)),
            ],
            out_specs=pl.BlockSpec((1, 1, hb, r, Wp, rC),
                                   lambda n, b: (n, b, 0, 0, 0, 0)),
            scratch_shapes=[pltpu.VMEM((hb * Wp, Cout), jnp.float32)],
        ),
        compiler_params=pltpu.CompilerParams(
            dimension_semantics=("parallel", "parallel"),
            vmem_limit_bytes=vmem_limit_bytes),
        cost_estimate=pl.CostEstimate(flops=flops, transcendentals=0,
                                      bytes_accessed=bytes_accessed),
    )(x_band, w_tap, b2d)

    # Output array is already in pixel-shuffled NHWC element order: pure reshape (+ crops
    # only if W/H were padded).
    out = out6
    if Wp != W:
        out = out[:, :, :, :, :W, :]
    out = out.reshape(N, Hp * r, W * r, C)
    if Hp != H:
        out = out[:, :H * r, :, :]
    return out


# --------------------------------------------------------------------------------------
# Full _UpsampleBlock forward.
# --------------------------------------------------------------------------------------
def _stages_and_r(scale):
    if scale in (2, 4, 8):
        return int(round(math.log2(scale))), 2
    if scale == 3:
        return 1, 3
    raise ValueError("scale must be one of {2, 3, 4, 8}")


def upsample_block_forward(x_nchw, weights, biases, *, scale, compute_dtype=jnp.bfloat16):
    """Forward of _UpsampleBlock: [Conv3x3(pad=1) -> ReLU -> PixelShuffle(r)] per stage.

    x_nchw: (N, C, H, W); weights[i]: (r*r*C, C, 3, 3); biases[i]: (r*r*C,)."""
    stages, r = _stages_and_r(scale)
    assert len(weights) == len(biases) == stages

    in_dtype = x_nchw.dtype
    cdt = compute_dtype if compute_dtype is not None else in_dtype
    x = jnp.transpose(x_nchw, (0, 2, 3, 1))            # NCHW -> NHWC once
    for i, (w, b) in enumerate(zip(weights, biases)):
        last = (i == stages - 1)
        x = conv3x3_relu_pixelshuffle_nhwc(
            x, w, b, r, compute_dtype=cdt,
            out_dtype=(in_dtype if last else cdt))     # bf16 intermediates, caller dtype out
    return jnp.transpose(x, (0, 3, 1, 2))              # NHWC -> NCHW once


# --------------------------------------------------------------------------------------
# Pure-JAX reference (XLA conv + ReLU + PixelShuffle in NCHW).
# --------------------------------------------------------------------------------------
def _pixel_shuffle_nchw(x, r):
    N, crr, H, W = x.shape
    C = crr // (r * r)
    x = x.reshape(N, C, r, r, H, W)
    x = jnp.transpose(x, (0, 1, 4, 2, 5, 3))
    return x.reshape(N, C, H * r, W * r)


def _reference_upsample_block(x_nchw, weights, biases, *, scale):
    _, r = _stages_and_r(scale)
    out = x_nchw
    for w, b in zip(weights, biases):
        out = jax.lax.conv_general_dilated(
            out, w, window_strides=(1, 1), padding=((1, 1), (1, 1)),
            dimension_numbers=("NCHW", "OIHW", "NCHW"),
            precision=jax.lax.Precision.HIGHEST)
        out = jnp.maximum(out + b.reshape(1, -1, 1, 1), 0.0)
        out = _pixel_shuffle_nchw(out, r)
    return out


if __name__ == "__main__":
    key = jax.random.PRNGKey(0)
    k_x, k_params = jax.random.split(key)

    N, C, H, W = 2, 4, 16, 16
    x = jax.random.normal(k_x, (N, C, H, W), dtype=jnp.float32)

    for scale in (2, 3, 4):                    # covers both branches + multi-stage chaining
        stages, r = _stages_and_r(scale)
        weights, biases = [], []
        kk = k_params
        for _ in range(stages):
            kk, k_w, k_b = jax.random.split(kk, 3)
            weights.append(0.1 * jax.random.normal(k_w, (r * r * C, C, 3, 3), jnp.float32))
            biases.append(0.1 * jax.random.normal(k_b, (r * r * C,), jnp.float32))

        ref = _reference_upsample_block(x, weights, biases, scale=scale)

        # Exact f32 path.
        fwd_f32 = jax.jit(functools.partial(upsample_block_forward, scale=scale,
                                            compute_dtype=jnp.float32))
        out_f32 = jax.block_until_ready(fwd_f32(x, weights, biases))
        assert out_f32.shape == (N, C, H * scale, W * scale), out_f32.shape
        assert jnp.allclose(out_f32, ref, atol=1e-4, rtol=1e-4), f"f32 mismatch scale={scale}"

        # Default bf16-MXU path (f32 accumulation): looser tolerance vs HIGHEST reference.
        fwd_bf16 = jax.jit(functools.partial(upsample_block_forward, scale=scale))
        out_bf16 = jax.block_until_ready(fwd_bf16(x, weights, biases))
        assert out_bf16.shape == (N, C, H * scale, W * scale), out_bf16.shape
        assert jnp.allclose(out_bf16.astype(jnp.float32), ref, atol=3e-2, rtol=3e-2), \
            f"bf16 mismatch scale={scale}"

    print("KERNEL_OK")
</pallas_src>

<mosaic_0001>
module attributes {stable_mosaic.version = 11 : i64} {
  func.func @_conv3x3_relu_ps_kernel(%arg0: i32, %arg1: i32, %arg2: memref<1x1x18x16x12xf32, #tpu.memory_space<vmem>>, %arg3: memref<3x12x16xf32, #tpu.memory_space<vmem>>, %arg4: memref<1x16xf32, #tpu.memory_space<vmem>>, %arg5: memref<1x1x16x2x16x8xf32, #tpu.memory_space<vmem>>, %arg6: memref<256x16xf32, #tpu.memory_space<vmem>>) attributes {dimension_semantics = [#tpu.dimension_semantics<parallel>, #tpu.dimension_semantics<parallel>], iteration_bounds = array<i64: 2, 1>, scalar_prefetch = 0 : i64, scratch_operands = 1 : i64, tpu.core_type = #tpu.core_type<tc>, window_params = [{transform_indices = @transform_0, window_bounds = array<i64: 1, 1, 18, 16, 12>}, {pipeline_mode = #tpu.pipeline_mode<synchronous>, transform_indices = @transform_1, window_bounds = array<i64: 3, 12, 16>}, {pipeline_mode = #tpu.pipeline_mode<synchronous>, transform_indices = @transform_2, window_bounds = array<i64: 1, 16>}, {transform_indices = @transform_3, window_bounds = array<i64: 1, 1, 16, 2, 16, 8>}]} {
    %c0 = arith.constant 0 : index
    %c0_0 = arith.constant 0 : index
    %c0_1 = arith.constant 0 : index
    %c0_2 = arith.constant 0 : index
    %c0_3 = arith.constant 0 : index
    %0 = vector.load %arg2[%c0, %c0_0, %c0_1, %c0_2, %c0_3] : memref<1x1x18x16x12xf32, #tpu.memory_space<vmem>>, vector<1x1x16x16x12xf32>
    %1 = vector.shape_cast %0 : vector<1x1x16x16x12xf32> to vector<16x16x12xf32>
    %2 = vector.shape_cast %1 : vector<16x16x12xf32> to vector<256x12xf32>
    %c0_4 = arith.constant 0 : index
    %c0_5 = arith.constant 0 : index
    %c0_6 = arith.constant 0 : index
    %3 = vector.load %arg3[%c0_4, %c0_5, %c0_6] : memref<3x12x16xf32, #tpu.memory_space<vmem>>, vector<1x12x16xf32>
    %4 = vector.shape_cast %3 : vector<1x12x16xf32> to vector<12x16xf32>
    %cst = arith.constant dense<0.000000e+00> : vector<256x16xf32>
    %5 = tpu.matmul %2, %4, %cst {dimension_numbers = #tpu.dot_dimension_numbers<[1], [0], [0], [1], [0, 0, 1, 1], [], []>} : vector<256x12xf32>, vector<12x16xf32>, vector<256x16xf32> -> vector<256x16xf32>
    %c0_7 = arith.constant 0 : index
    %c0_8 = arith.constant 0 : index
    %6 = vector.load %arg6[%c0_7, %c0_8] : memref<256x16xf32, #tpu.memory_space<vmem>>, vector<256x16xf32>
    tpu.vector_store %arg6[%c0_7, %c0_8], %5 {strides = array<i32>} : memref<256x16xf32, #tpu.memory_space<vmem>>, vector<256x16xf32>,
    %c0_9 = arith.constant 0 : index
    %c0_10 = arith.constant 0 : index
    %7 = vector.load %arg6[%c0_9, %c0_10] : memref<256x16xf32, #tpu.memory_space<vmem>>, vector<256x16xf32>
    %c0_11 = arith.constant 0 : index
    %c0_12 = arith.constant 0 : index
    %c1 = arith.constant 1 : index
    %c0_13 = arith.constant 0 : index
    %c0_14 = arith.constant 0 : index
    %8 = vector.load %arg2[%c0_11, %c0_12, %c1, %c0_13, %c0_14] : memref<1x1x18x16x12xf32, #tpu.memory_space<vmem>>, vector<1x1x16x16x12xf32>
    %9 = vector.shape_cast %8 : vector<1x1x16x16x12xf32> to vector<16x16x12xf32>
    %10 = vector.shape_cast %9 : vector<16x16x12xf32> to vector<256x12xf32>
    %c1_15 = arith.constant 1 : index
    %c0_16 = arith.constant 0 : index
    %c0_17 = arith.constant 0 : index
    %11 = vector.load %arg3[%c1_15, %c0_16, %c0_17] : memref<3x12x16xf32, #tpu.memory_space<vmem>>, vector<1x12x16xf32>
    %12 = vector.shape_cast %11 : vector<1x12x16xf32> to vector<12x16xf32>
    %cst_18 = arith.constant dense<0.000000e+00> : vector<256x16xf32>
    %13 = tpu.matmul %10, %12, %cst_18 {dimension_numbers = #tpu.dot_dimension_numbers<[1], [0], [0], [1], [0, 0, 1, 1], [], []>} : vector<256x12xf32>, vector<12x16xf32>, vector<256x16xf32> -> vector<256x16xf32>
    %14 = arith.addf %7, %13 : vector<256x16xf32>
    %c0_19 = arith.constant 0 : index
    %c0_20 = arith.constant 0 : index
    %15 = vector.load %arg6[%c0_19, %c0_20] : memref<256x16xf32, #tpu.memory_space<vmem>>, vector<256x16xf32>
    tpu.vector_store %arg6[%c0_19, %c0_20], %14 {strides = array<i32>} : memref<256x16xf32, #tpu.memory_space<vmem>>, vector<256x16xf32>,
    %c0_21 = arith.constant 0 : index
    %c0_22 = arith.constant 0 : index
    %16 = vector.load %arg6[%c0_21, %c0_22] : memref<256x16xf32, #tpu.memory_space<vmem>>, vector<256x16xf32>
    %c0_23 = arith.constant 0 : index
    %c0_24 = arith.constant 0 : index
    %c2 = arith.constant 2 : index
    %c0_25 = arith.constant 0 : index
    %c0_26 = arith.constant 0 : index
    %17 = vector.load %arg2[%c0_23, %c0_24, %c2, %c0_25, %c0_26] : memref<1x1x18x16x12xf32, #tpu.memory_space<vmem>>, vector<1x1x16x16x12xf32>
    %18 = vector.shape_cast %17 : vector<1x1x16x16x12xf32> to vector<16x16x12xf32>
    %19 = vector.shape_cast %18 : vector<16x16x12xf32> to vector<256x12xf32>
    %c2_27 = arith.constant 2 : index
    %c0_28 = arith.constant 0 : index
    %c0_29 = arith.constant 0 : index
    %20 = vector.load %arg3[%c2_27, %c0_28, %c0_29] : memref<3x12x16xf32, #tpu.memory_space<vmem>>, vector<1x12x16xf32>
    %21 = vector.shape_cast %20 : vector<1x12x16xf32> to vector<12x16xf32>
    %cst_30 = arith.constant dense<0.000000e+00> : vector<256x16xf32>
    %22 = tpu.matmul %19, %21, %cst_30 {dimension_numbers = #tpu.dot_dimension_numbers<[1], [0], [0], [1], [0, 0, 1, 1], [], []>} : vector<256x12xf32>, vector<12x16xf32>, vector<256x16xf32> -> vector<256x16xf32>
    %23 = arith.addf %16, %22 : vector<256x16xf32>
    %c0_31 = arith.constant 0 : index
    %c0_32 = arith.constant 0 : index
    %24 = vector.load %arg6[%c0_31, %c0_32] : memref<256x16xf32, #tpu.memory_space<vmem>>, vector<256x16xf32>
    tpu.vector_store %arg6[%c0_31, %c0_32], %23 {strides = array<i32>} : memref<256x16xf32, #tpu.memory_space<vmem>>, vector<256x16xf32>,
    %c0_33 = arith.constant 0 : index
    %c0_34 = arith.constant 0 : index
    %25 = vector.load %arg6[%c0_33, %c0_34] : memref<256x16xf32, #tpu.memory_space<vmem>>, vector<256x16xf32>
    %c0_35 = arith.constant 0 : index
    %c0_36 = arith.constant 0 : index
    %26 = vector.load %arg4[%c0_35, %c0_36] : memref<1x16xf32, #tpu.memory_space<vmem>>, vector<1x16xf32>
    %27 = vector.broadcast %26 : vector<1x16xf32> to vector<256x16xf32>
    %28 = arith.addf %25, %27 : vector<256x16xf32>
    %cst_37 = arith.constant 0.000000e+00 : f32
    %29 = vector.broadcast %cst_37 : f32 to vector<256x16xf32>
    %30 = arith.maximumf %28, %29 : vector<256x16xf32>
    %31 = vector.shape_cast %30 : vector<256x16xf32> to vector<16x16x16xf32>
    %32 = vector.extract_strided_slice %31 {offsets = [0, 0, 0], sizes = [16, 16, 8], strides = [1, 1, 1]} : vector<16x16x16xf32> to vector<16x16x8xf32>
    %c0_38 = arith.constant 0 : index
    %c0_39 = arith.constant 0 : index
    %c0_40 = arith.constant 0 : index
    %c0_41 = arith.constant 0 : index
    %c0_42 = arith.constant 0 : index
    %c0_43 = arith.constant 0 : index
    %33 = vector.load %arg5[%c0_38, %c0_39, %c0_40, %c0_41, %c0_42, %c0_43] : memref<1x1x16x2x16x8xf32, #tpu.memory_space<vmem>>, vector<1x1x16x1x16x8xf32>
    %34 = vector.shape_cast %33 : vector<1x1x16x1x16x8xf32> to vector<16x16x8xf32>
    %35 = vector.shape_cast %32 : vector<16x16x8xf32> to vector<1x1x16x1x16x8xf32>
    tpu.vector_store %arg5[%c0_38, %c0_39, %c0_40, %c0_41, %c0_42, %c0_43], %35 {strides = array<i32>} : memref<1x1x16x2x16x8xf32, #tpu.memory_space<vmem>>, vector<1x1x16x1x16x8xf32>,
    %36 = vector.extract_strided_slice %31 {offsets = [0, 0, 8], sizes = [16, 16, 8], strides = [1, 1, 1]} : vector<16x16x16xf32> to vector<16x16x8xf32>
    %c0_44 = arith.constant 0 : index
    %c0_45 = arith.constant 0 : index
    %c0_46 = arith.constant 0 : index
    %c1_47 = arith.constant 1 : index
    %c0_48 = arith.constant 0 : index
    %c0_49 = arith.constant 0 : index
    %37 = vector.load %arg5[%c0_44, %c0_45, %c0_46, %c1_47, %c0_48, %c0_49] : memref<1x1x16x2x16x8xf32, #tpu.memory_space<vmem>>, vector<1x1x16x1x16x8xf32>
    %38 = vector.shape_cast %37 : vector<1x1x16x1x16x8xf32> to vector<16x16x8xf32>
    %39 = vector.shape_cast %36 : vector<16x16x8xf32> to vector<1x1x16x1x16x8xf32>
    tpu.vector_store %arg5[%c0_44, %c0_45, %c0_46, %c1_47, %c0_48, %c0_49], %39 {strides = array<i32>} : memref<1x1x16x2x16x8xf32, #tpu.memory_space<vmem>>, vector<1x1x16x1x16x8xf32>,
    return
  }
  func.func @transform_0(%arg0: i32, %arg1: i32) -> (i32, i32, i32, i32, i32) {
    %c0_i32 = arith.constant 0 : i32
    %c0_i32_0 = arith.constant 0 : i32
    %c0_i32_1 = arith.constant 0 : i32
    %c0_i32_2 = arith.constant 0 : i32
    return %arg0, %arg1, %c0_i32, %c0_i32_0, %c0_i32_1 : i32, i32, i32, i32, i32
  }
  func.func @transform_1(%arg0: i32, %arg1: i32) -> (i32, i32, i32) {
    %c0_i32 = arith.constant 0 : i32
    %c0_i32_0 = arith.constant 0 : i32
    %c0_i32_1 = arith.constant 0 : i32
    %c0_i32_2 = arith.constant 0 : i32
    return %c0_i32, %c0_i32_0, %c0_i32_1 : i32, i32, i32
  }
  func.func @transform_2(%arg0: i32, %arg1: i32) -> (i32, i32) {
    %c0_i32 = arith.constant 0 : i32
    %c0_i32_0 = arith.constant 0 : i32
    %c0_i32_1 = arith.constant 0 : i32
    return %c0_i32, %c0_i32_0 : i32, i32
  }
  func.func @transform_3(%arg0: i32, %arg1: i32) -> (i32, i32, i32, i32, i32, i32) {
    %c0_i32 = arith.constant 0 : i32
    %c0_i32_0 = arith.constant 0 : i32
    %c0_i32_1 = arith.constant 0 : i32
    %c0_i32_2 = arith.constant 0 : i32
    %c0_i32_3 = arith.constant 0 : i32
    return %arg0, %arg1, %c0_i32, %c0_i32_0, %c0_i32_1, %c0_i32_2 : i32, i32, i32, i32, i32, i32
  }
}

</mosaic_0001>

<bundles_post_ra>
// kernel: upsample_block_forward.1
= control target key start
LH: loop header
LB: loop body
LE: loop exit
PB: predicated region body
PF: predicated region fallthrough
CT: control target
= control target key end

     0   :  { %s1850_s12 = smov 0   ;;  %s1852_s13 = smov 0   ;;  %s2411_s0 = inlined_call_operand.vmem [shape: f32[2,1,18,16,12], index: 0, kind: input, shape index: {}]   ;;  %s2412_s1 = inlined_call_operand.vmem [shape: f32[3,12,16], index: 1, kind: input, shape index: {}]   ;;  %s2413_s2 = inlined_call_operand.vmem [shape: f32[1,16], index: 2, kind: input, shape index: {}]   ;;  %s2414_s3 = inlined_call_operand.vmem [shape: f32[2,1,16,2,16,8], index: 3, kind: output, shape index: {}]  }
   0x1   :  { %s1854_s14 = smov 0  }
   0x2 LB: > { %s25_s15 = sadd.s32 1, %s1823_s13  ;;  %p1566_p0 = scmp.ge.s32.totalorder %s1827_s14, 1  ;;  %s1827_s14 = sphi %s1854_s14, %s13_s14   ;;  %s1823_s13 = sphi %s1852_s13, %s2416_s13   ;;  %s1819_s12 = sphi %s1850_s12, %s2415_s12  }
   0x3   : > { %p27_p1 = scmp.ge.s32.totalorder %s25_s15, 2  ;;  %p157_p2 = scmp.lt.s32.totalorder %s1827_s14, 3 }
   0x5   : > { %s2418_s15 = smov (%p27_p1, %s25_s15), 0  ;;  %p158_p3 = pnand %p1566_p0, %p157_p2 }
   0x6   : > { %p189_p4 = scmp.lt.s32.totalorder (!%p158_p3), %s1819_s12, 1  ;;  %s1829_s11 = smov (!%p158_p3), 120  }
   0x7   : > { %161 = sbr.rel (%p158_p3) target bundleno = 478 (0x1de), region = 32 }
   0xc   : > { %v240_v0 = vld [vmem:[%s2412_s1 + $0x8] sm:$0xf]  ;;  %vm338_vm0 = vcmask 1043456   ;;  %v239_v1 = vld [vmem:[%s2412_s1] sm:$0xff]  ;;  %v1636_v2 = vld [vmem:[%s2412_s1 + $0x18] sm:$0xf] }
   0xd   : > { %1570 = vmatpush.msk.msra.mxu0 %vm338_vm0, %v240_v0  ;;  %1772 = vmatpush.msk.msra.mxu3 %vm338_vm0, %v240_v0  ;;  %v1635_v3 = vld [vmem:[%s2412_s1 + $0x10] sm:$0xff]  ;;  %v1703_v4 = vld [vmem:[%s2412_s1 + $0x28] sm:$0xf]  ;;  %s2420_s12 = smov (!%p189_p4, %s1819_s12), 1  ;;  %v1702_v5 = vld [vmem:[%s2412_s1 + $0x20] sm:$0xff]  ;;  %vm241_vm1 = vcmask 97280  }
   0xe   : > { %1637 = vmatpush.msk.msra.mxu1 %vm338_vm0, %v1636_v2  ;;  %1704 = vmatpush.msk.msra.mxu2 %vm338_vm0, %v1703_v4  ;;  %s1778_s28 = smul.u32 288, %s2420_s12  ;;  %vm455_vm2 = vcmask 130048   ;;  %v2071_v61 = vld [vmem:[%s2413_s2] ss:$0 sm:$0xff]  ;;  %s1771_s7 = sshll.u32 %s2420_s12, 9  ;;  %vm1276_vm3 = vcmask 64512  }
   0xf   : > { %357 = vmatpush.msra.mxu0 %v239_v1  ;;  %1773 = vmatpush.msra.mxu3 %v239_v1  ;;  %s2091_s10 = scalar_lea.vmem %s2414_s3, %s1771_s7 }
  0x10   : > { %670 = vmatpush.msra.mxu1 %v1635_v3  ;;  %1014 = vmatpush.msra.mxu2 %v1702_v5  ;;  %s1897_s4 = scalar_lea.vmem %s2411_s0, %s1778_s28 }
  0x11   : > { %1774 = vmatpush.msk.msrb.mxu3 %vm338_vm0, %v1636_v2  ;;  %v207_v6 = vld [vmem:[%s1897_s4] sm:$0xff]  ;;  %v1603_v8 = vld [vmem:[%s1897_s4 + $0x10] sm:$0xff]  ;;  %v208_v10 = vld [vmem:[%s1897_s4 + $0x8] sm:$0xff] }
  0x12   : > { %v1901_v7 = vld [vmem:[%s1897_s4 + $0xc0] sm:$0xff]  ;;  %1571 = vmatmul.msk.f32.vlgmr.msra.gmra.mxu0 %vm241_vm1, %v207_v6  ;;  %1638 = vmatmul.msk.f32.vlgmr.msra.gmra.mxu1 %vm241_vm1, %v1603_v8  ;;  %v1913_v11 = vld [vmem:[%s1897_s4 + $0xc8] sm:$0xff]  ;;  %v1604_v12 = vld [vmem:[%s1897_s4 + $0x18] sm:$0xff] }
  0x13   : > { %1775 = vmatpush.msrb.mxu3 %v1635_v3  ;;  %v1670_v9 = vld [vmem:[%s1897_s4 + $0x20] sm:$0xff]  ;;  %v1671_v13 = vld [vmem:[%s1897_s4 + $0x28] sm:$0xff]  ;;  %v1923_v14 = vld [vmem:[%s1897_s4 + $0xd0] sm:$0xff] }
  0x14   : > { %1595 = vmatmul.msk.f32.vlgmr.msra.gmra.mxu3 %vm241_vm1, %v1901_v7  ;;  %1705 = vmatmul.msk.f32.vlgmr.msra.gmra.mxu2 %vm241_vm1, %v1670_v9  ;;  %v1672_v15 = vld [vmem:[%s1897_s4 + $0x30] sm:$0xff]  ;;  %v1932_v16 = vld [vmem:[%s1897_s4 + $0xd8] sm:$0xff]  ;;  %v1941_v18 = vld [vmem:[%s1897_s4 + $0xe0] sm:$0xff] }
  0x15   : > { %1776 = vmatpush.msk.msra.mxu3 %vm338_vm0, %v1703_v4  ;;  %v1673_v17 = vld [vmem:[%s1897_s4 + $0x38] sm:$0xff]  ;;  %v1674_v19 = vld [vmem:[%s1897_s4 + $0x40] sm:$0xff]  ;;  %v1950_v20 = vld [vmem:[%s1897_s4 + $0xe8] sm:$0xff] }
  0x16   : > { %v1675_v21 = vld [vmem:[%s1897_s4 + $0x48] sm:$0xff]  ;;  %v1959_v22 = vld [vmem:[%s1897_s4 + $0xf0] sm:$0xff]  ;;  %v1968_v24 = vld [vmem:[%s1897_s4 + $0xf8] sm:$0xff] }
  0x17   : > { %1777 = vmatpush.msra.mxu3 %v1702_v5  ;;  %v1676_v23 = vld [vmem:[%s1897_s4 + $0x50] sm:$0xff]  ;;  %v1677_v25 = vld [vmem:[%s1897_s4 + $0x58] sm:$0xff]  ;;  %v1678_v26 = vld [vmem:[%s1897_s4 + $0x60] sm:$0xff] }
  0x18   : > { %v1679_v27 = vld [vmem:[%s1897_s4 + $0x68] sm:$0xff]  ;;  %v1680_v28 = vld [vmem:[%s1897_s4 + $0x70] sm:$0xff]  ;;  %v1681_v29 = vld [vmem:[%s1897_s4 + $0x78] sm:$0xff] }
  0x19   : > { %v1682_v30 = vld [vmem:[%s1897_s4 + $0x80] sm:$0xff]  ;;  %v1683_v31 = vld [vmem:[%s1897_s4 + $0x88] sm:$0xff]  ;;  %v1684_v33 = vld [vmem:[%s1897_s4 + $0x90] sm:$0xff] }
  0x1a   : > { %1572 = vmatmul.msk.f32.gmra.mxu0 %vm241_vm1, %v208_v10  ;;  %1639 = vmatmul.msk.f32.gmra.mxu1 %vm241_vm1, %v1604_v12  ;;  %v2013_v32 = vld [vmem:[%s1897_s4 + $0x100] sm:$0xff]  ;;  %v2022_v34 = vld [vmem:[%s1897_s4 + $0x108] sm:$0xff]  ;;  %v1685_v35 = vld [vmem:[%s1897_s4 + $0x98] sm:$0xff] }
  0x1b   : > { %v2032_v38 = vld [vmem:[%s1897_s4 + $0xa0] sm:$0xff]  ;;  %v2043_v45 = vld [vmem:[%s1897_s4 + $0xa8] sm:$0xff]  ;;  %v2055_v52 = vld [vmem:[%s1897_s4 + $0xb0] sm:$0xff] }
  0x1c   : > { %1596 = vmatmul.msk.f32.gmra.mxu3 %vm241_vm1, %v1913_v11  ;;  %1706 = vmatmul.msk.f32.gmra.mxu2 %vm241_vm1, %v1671_v13  ;;  %v2074_v62 = vld [vmem:[%s1897_s4 + $0xb8] sm:$0xff] }
  0x22   : > { %1573 = vmatmul.msk.f32.gmra.mxu0 %vm241_vm1, %v1603_v8  ;;  %1640 = vmatmul.msk.f32.gmra.mxu1 %vm241_vm1, %v1670_v9 }
  0x24   : > { %1597 = vmatmul.msk.f32.gmra.mxu3 %vm241_vm1, %v1923_v14  ;;  %1707 = vmatmul.msk.f32.gmra.mxu2 %vm241_vm1, %v1672_v15 }
  0x2a   : > { %1574 = vmatmul.msk.f32.gmra.mxu0 %vm241_vm1, %v1604_v12  ;;  %1641 = vmatmul.msk.f32.gmra.mxu1 %vm241_vm1, %v1671_v13 }
  0x2c   : > { %1598 = vmatmul.msk.f32.gmra.mxu3 %vm241_vm1, %v1932_v16  ;;  %1708 = vmatmul.msk.f32.gmra.mxu2 %vm241_vm1, %v1673_v17 }
  0x32   : > { %1575 = vmatmul.msk.f32.gmra.mxu0 %vm241_vm1, %v1670_v9  ;;  %1642 = vmatmul.msk.f32.gmra.mxu1 %vm241_vm1, %v1672_v15 }
  0x34   : > { %1599 = vmatmul.msk.f32.gmra.mxu3 %vm241_vm1, %v1941_v18  ;;  %1709 = vmatmul.msk.f32.gmra.mxu2 %vm241_vm1, %v1674_v19 }
  0x3a   : > { %1576 = vmatmul.msk.f32.gmra.mxu0 %vm241_vm1, %v1671_v13  ;;  %1643 = vmatmul.msk.f32.gmra.mxu1 %vm241_vm1, %v1673_v17 }
  0x3c   : > { %1600 = vmatmul.msk.f32.gmra.mxu3 %vm241_vm1, %v1950_v20  ;;  %1710 = vmatmul.msk.f32.gmra.mxu2 %vm241_vm1, %v1675_v21 }
  0x42   : > { %1577 = vmatmul.msk.f32.gmra.mxu0 %vm241_vm1, %v1672_v15  ;;  %1644 = vmatmul.msk.f32.gmra.mxu1 %vm241_vm1, %v1674_v19 }
  0x44   : > { %1601 = vmatmul.msk.f32.gmra.mxu3 %vm241_vm1, %v1959_v22  ;;  %1711 = vmatmul.msk.f32.gmra.mxu2 %vm241_vm1, %v1676_v23 }
  0x4a   : > { %1578 = vmatmul.msk.f32.gmra.mxu0 %vm241_vm1, %v1673_v17  ;;  %1645 = vmatmul.msk.f32.gmra.mxu1 %vm241_vm1, %v1675_v21 }
  0x4c   : > { %1602 = vmatmul.msk.f32.gmra.mxu3 %vm241_vm1, %v1968_v24  ;;  %1712 = vmatmul.msk.f32.gmra.mxu2 %vm241_vm1, %v1677_v25 }
  0x52   : > { %1579 = vmatmul.msk.f32.gmra.mxu0 %vm241_vm1, %v1674_v19  ;;  %1646 = vmatmul.msk.f32.gmra.mxu1 %vm241_vm1, %v1676_v23 }
  0x54   : > { %1662 = vmatmul.msk.f32.vlgmr.msrb.gmra.mxu3 %vm241_vm1, %v1923_v14  ;;  %1713 = vmatmul.msk.f32.gmra.mxu2 %vm241_vm1, %v1678_v26 }
  0x5a   : > { %1580 = vmatmul.msk.f32.gmra.mxu0 %vm241_vm1, %v1675_v21  ;;  %1647 = vmatmul.msk.f32.gmra.mxu1 %vm241_vm1, %v1677_v25 }
  0x5c   : > { %1663 = vmatmul.msk.f32.gmra.mxu3 %vm241_vm1, %v1932_v16  ;;  %1714 = vmatmul.msk.f32.gmra.mxu2 %vm241_vm1, %v1679_v27 }
  0x62   : > { %1581 = vmatmul.msk.f32.gmra.mxu0 %vm241_vm1, %v1676_v23  ;;  %1648 = vmatmul.msk.f32.gmra.mxu1 %vm241_vm1, %v1678_v26 }
  0x64   : > { %1664 = vmatmul.msk.f32.gmra.mxu3 %vm241_vm1, %v1941_v18  ;;  %1715 = vmatmul.msk.f32.gmra.mxu2 %vm241_vm1, %v1680_v28 }
  0x6a   : > { %1582 = vmatmul.msk.f32.gmra.mxu0 %vm241_vm1, %v1677_v25  ;;  %1649 = vmatmul.msk.f32.gmra.mxu1 %vm241_vm1, %v1679_v27 }
  0x6c   : > { %1665 = vmatmul.msk.f32.gmra.mxu3 %vm241_vm1, %v1950_v20  ;;  %1716 = vmatmul.msk.f32.gmra.mxu2 %vm241_vm1, %v1681_v29 }
  0x72   : > { %1583 = vmatmul.msk.f32.gmra.mxu0 %vm241_vm1, %v1678_v26  ;;  %1650 = vmatmul.msk.f32.gmra.mxu1 %vm241_vm1, %v1680_v28 }
  0x74   : > { %1666 = vmatmul.msk.f32.gmra.mxu3 %vm241_vm1, %v1959_v22  ;;  %1717 = vmatmul.msk.f32.gmra.mxu2 %vm241_vm1, %v1682_v30 }
  0x7a   : > { %1584 = vmatmul.msk.f32.gmra.mxu0 %vm241_vm1, %v1679_v27  ;;  %1651 = vmatmul.msk.f32.gmra.mxu1 %vm241_vm1, %v1681_v29 }
  0x7c   : > { %1667 = vmatmul.msk.f32.gmra.mxu3 %vm241_vm1, %v1968_v24  ;;  %1718 = vmatmul.msk.f32.gmra.mxu2 %vm241_vm1, %v1683_v31 }
  0x82   : > { %1585 = vmatmul.msk.f32.gmra.mxu0 %vm241_vm1, %v1680_v28  ;;  %1652 = vmatmul.msk.f32.gmra.mxu1 %vm241_vm1, %v1682_v30 }
  0x84   : > { %1668 = vmatmul.msk.f32.gmra.mxu3 %vm241_vm1, %v2013_v32  ;;  %1719 = vmatmul.msk.f32.gmra.mxu2 %vm241_vm1, %v1684_v33 }
  0x8a   : > { %1586 = vmatmul.msk.f32.gmra.mxu0 %vm241_vm1, %v1681_v29  ;;  %1653 = vmatmul.msk.f32.gmra.mxu1 %vm241_vm1, %v1683_v31 }
  0x8c   : > { %1669 = vmatmul.msk.f32.gmra.mxu3 %vm241_vm1, %v2022_v34  ;;  %1720 = vmatmul.msk.f32.gmra.mxu2 %vm241_vm1, %v1685_v35 }
  0x8f   : > { %v359_v36 = vpop.f32.mrf.mxu0  ;;  %v672_v37 = vpop.f32.mrf.mxu1 }
  0x90   : > { %456 = vst.msk [vmem:[#allocation2] sm:$0xff] %vm455_vm2, %v359_v36 }
  0x92   : > { %1587 = vmatmul.msk.f32.gmra.mxu0 %vm241_vm1, %v1682_v30  ;;  %1654 = vmatmul.msk.f32.gmra.mxu1 %vm241_vm1, %v1684_v33 }
  0x94   : > { %1729 = vmatmul.msk.f32.vlgmr.msra.gmra.mxu3 %vm241_vm1, %v1941_v18  ;;  %1721 = vmatmul.msk.f32.gmra.mxu2 %vm241_vm1, %v2032_v38 }
  0x97   : > { %v431_v39 = vpop.f32.mrf.mxu3  ;;  %v1016_v40 = vpop.f32.mrf.mxu2  ;;  %v488_v42 = vld [vmem:[#allocation2] sm:$0xff] }
  0x98   : > { %480 = vst.msk [vmem:[#allocation2 + $0xc0] sm:$0xff] %vm455_vm2, %v431_v39  ;;  %v362_v41 = vpop.f32.mrf.mxu0  ;;  %v768_v43 = vadd.f32 %v672_v37, %v488_v42  ;;  %v675_v44 = vpop.f32.mrf.mxu1 }
  0x99   : > { %457 = vst.msk [vmem:[#allocation2 + $0x8] sm:$0xff] %vm455_vm2, %v362_v41 }
  0x9a   : > { %800 = vst.msk [vmem:[#allocation2] sm:$0xff] %vm455_vm2, %v768_v43  ;;  %1588 = vmatmul.msk.f32.gmra.mxu0 %vm241_vm1, %v1683_v31  ;;  %1655 = vmatmul.msk.f32.gmra.mxu1 %vm241_vm1, %v1685_v35 }
  0x9c   : > { %1730 = vmatmul.msk.f32.gmra.mxu3 %vm241_vm1, %v1950_v20  ;;  %1722 = vmatmul.msk.f32.gmra.mxu2 %vm241_vm1, %v2043_v45 }
  0x9f   : > { %v434_v46 = vpop.f32.mrf.mxu3  ;;  %v1019_v47 = vpop.f32.mrf.mxu2 }
  0xa0   : > { %481 = vst.msk [vmem:[#allocation2 + $0xc8] sm:$0xff] %vm455_vm2, %v434_v46  ;;  %v365_v48 = vpop.f32.mrf.mxu0  ;;  %v489_v49 = vld [vmem:[#allocation2 + $0x8] sm:$0xff]  ;;  %v678_v51 = vpop.f32.mrf.mxu1  ;;  %v1701_v46 = vld [vmem:[%s1897_s4 + $0x118] sm:$0xff] }
  0xa1   : > { %458 = vst.msk [vmem:[#allocation2 + $0x10] sm:$0xff] %vm455_vm2, %v365_v48  ;;  %v769_v50 = vadd.f32 %v675_v44, %v489_v49  ;;  %v832_v53 = vld [vmem:[#allocation2] sm:$0xff] }
  0xa2   : > { %v1112_v54 = vadd.f32 %v1016_v40, %v832_v53  ;;  %1589 = vmatmul.msk.f32.gmra.mxu0 %vm241_vm1, %v1684_v33  ;;  %1656 = vmatmul.msk.f32.gmra.mxu1 %vm241_vm1, %v2032_v38 }
  0xa3   : > { %801 = vst.msk [vmem:[#allocation2 + $0x8] sm:$0xff] %vm455_vm2, %v769_v50 }
  0xa4   : > { %1731 = vmatmul.msk.f32.gmra.mxu3 %vm241_vm1, %v1959_v22  ;;  %1723 = vmatmul.msk.f32.gmra.mxu2 %vm241_vm1, %v2055_v52  ;;  %1144 = vst.msk [vmem:[#allocation2] sm:$0xff] %vm455_vm2, %v1112_v54 }
  0xa7   : > { %v437_v55 = vpop.f32.mrf.mxu3  ;;  %v1022_v56 = vpop.f32.mrf.mxu2 }
  0xa8   : > { %482 = vst.msk [vmem:[#allocation2 + $0xd0] sm:$0xff] %vm455_vm2, %v437_v55  ;;  %v368_v57 = vpop.f32.mrf.mxu0  ;;  %v490_v58 = vld [vmem:[#allocation2 + $0x10] sm:$0xff]  ;;  %v681_v60 = vpop.f32.mrf.mxu1 }
  0xa9   : > { %459 = vst.msk [vmem:[#allocation2 + $0x18] sm:$0xff] %vm455_vm2, %v368_v57  ;;  %v770_v59 = vadd.f32 %v678_v51, %v490_v58 }
  0xaa   : > { %v833_v63 = vld [vmem:[#allocation2 + $0x8] sm:$0xff]  ;;  %1590 = vmatmul.msk.f32.gmra.mxu0 %vm241_vm1, %v1685_v35  ;;  %1657 = vmatmul.msk.f32.gmra.mxu1 %vm241_vm1, %v2043_v45 }
  0xab   : > { %802 = vst.msk [vmem:[#allocation2 + $0x10] sm:$0xff] %vm455_vm2, %v770_v59  ;;  %v1113_v0 = vadd.f32 %v1019_v47, %v833_v63  ;;  %v1176_v1 = vld [vmem:[#allocation2] sm:$0xff] }
  0xac   : > { %1732 = vmatmul.msk.f32.gmra.mxu3 %vm241_vm1, %v1968_v24  ;;  %1724 = vmatmul.msk.f32.gmra.mxu2 %vm241_vm1, %v2074_v62  ;;  %v1212_v2 = vadd.f32 %v2071_v61, %v1176_v1 }
  0xad   : > { %1145 = vst.msk [vmem:[#allocation2 + $0x8] sm:$0xff] %vm455_vm2, %v1113_v0 }
  0xae   : > { %v1244_v4 = vmax.f32 %v1212_v2, 0.0 }
  0xaf   : > { %v440_v3 = vpop.f32.mrf.mxu3  ;;  %v1025_v5 = vpop.f32.mrf.mxu2 }
  0xb0   : > { %483 = vst.msk [vmem:[#allocation2 + $0xd8] sm:$0xff] %vm455_vm2, %v440_v3  ;;  %v371_v6 = vpop.f32.mrf.mxu0  ;;  %v491_v8 = vld [vmem:[#allocation2 + $0x18] sm:$0xff]  ;;  %1341 = vrot.lane.b32.xlu0 %v1244_v4, %s1829_s11  ;;  %v684_v10 = vpop.f32.mrf.mxu1 }
  0xb1   : > { %460 = vst.msk [vmem:[#allocation2 + $0x20] sm:$0xff] %vm455_vm2, %v371_v6  ;;  %v771_v9 = vadd.f32 %v681_v60, %v491_v8  ;;  %v512_v60 = vld [vmem:[#allocation2 + $0xc0] sm:$0xff] }
  0xb2   : > { %1277 = vst.msk [vmem:[%s2091_s10] sm:$0xff] %vm1276_vm3, %v1244_v4  ;;  %v834_v12 = vld [vmem:[#allocation2 + $0x10] sm:$0xff]  ;;  %1591 = vmatmul.msk.f32.gmra.mxu0 %vm241_vm1, %v2032_v38  ;;  %1658 = vmatmul.msk.f32.gmra.mxu1 %vm241_vm1, %v2055_v52 }
  0xb3   : > { %803 = vst.msk [vmem:[#allocation2 + $0x18] sm:$0xff] %vm455_vm2, %v771_v9  ;;  %v1114_v13 = vadd.f32 %v1022_v56, %v834_v12  ;;  %v513_v12 = vld [vmem:[#allocation2 + $0xc8] sm:$0xff] }
  0xb4   : > { %1733 = vmatmul.msk.f32.gmra.mxu3 %vm241_vm1, %v2013_v32  ;;  %v1177_v15 = vld [vmem:[#allocation2 + $0x8] sm:$0xff]  ;;  %1725 = vmatmul.msk.f32.gmra.mxu2 %vm241_vm1, %v1901_v7 }
  0xb5   : > { %1146 = vst.msk [vmem:[#allocation2 + $0x10] sm:$0xff] %vm455_vm2, %v1114_v13  ;;  %v1213_v17 = vadd.f32 %v2071_v61, %v1177_v15 }
  0xb7   : > { %v443_v18 = vpop.f32.mrf.mxu3  ;;  %v1245_v19 = vmax.f32 %v1213_v17, 0.0  ;;  %v1028_v20 = vpop.f32.mrf.mxu2 }
  0xb8   : > { %484 = vst.msk [vmem:[#allocation2 + $0xe0] sm:$0xff] %vm455_vm2, %v443_v18  ;;  %v374_v21 = vpop.f32.mrf.mxu0  ;;  %v492_v22 = vld [vmem:[#allocation2 + $0x20] sm:$0xff]  ;;  %v687_v24 = vpop.f32.mrf.mxu1 }
  0xb9   : > { %461 = vst.msk [vmem:[#allocation2 + $0x28] sm:$0xff] %vm455_vm2, %v374_v21  ;;  %v772_v23 = vadd.f32 %v684_v10, %v492_v22  ;;  %1343 = vrot.lane.b32.xlu0 %v1245_v19, %s1829_s11 }
  0xba   : > { %1278 = vst.msk [vmem:[%s2091_s10 + $0x8] sm:$0xff] %vm1276_vm3, %v1245_v19  ;;  %v835_v25 = vld [vmem:[#allocation2 + $0x18] sm:$0xff]  ;;  %1592 = vmatmul.msk.f32.gmra.mxu0 %vm241_vm1, %v2043_v45  ;;  %1659 = vmatmul.msk.f32.gmra.mxu1 %vm241_vm1, %v2074_v62 }
  0xbb   : > { %804 = vst.msk [vmem:[#allocation2 + $0x20] sm:$0xff] %vm455_vm2, %v772_v23  ;;  %v1115_v26 = vadd.f32 %v1025_v5, %v835_v25 }
  0xbc   : > { %1734 = vmatmul.msk.f32.gmra.mxu3 %vm241_vm1, %v2022_v34  ;;  %v1178_v27 = vld [vmem:[#allocation2 + $0x10] sm:$0xff]  ;;  %1726 = vmatmul.msk.f32.gmra.mxu2 %vm241_vm1, %v1913_v11 }
  0xbd   : > { %1147 = vst.msk [vmem:[#allocation2 + $0x18] sm:$0xff] %vm455_vm2, %v1115_v26  ;;  %v1214_v28 = vadd.f32 %v2071_v61, %v1178_v27  ;;  %v1700_v34 = vld [vmem:[%s1897_s4 + $0x110] sm:$0xff] }
  0xbe   : > { %v514_v27 = vld [vmem:[#allocation2 + $0xd0] sm:$0xff] }
  0xbf   : > { %v446_v29 = vpop.f32.mrf.mxu3  ;;  %v1246_v30 = vmax.f32 %v1214_v28, 0.0  ;;  %v1031_v31 = vpop.f32.mrf.mxu2 }
  0xc0   : > { %485 = vst.msk [vmem:[#allocation2 + $0xe8] sm:$0xff] %vm455_vm2, %v446_v29  ;;  %v377_v32 = vpop.f32.mrf.mxu0  ;;  %v493_v33 = vld [vmem:[#allocation2 + $0x28] sm:$0xff]  ;;  %v690_v36 = vpop.f32.mrf.mxu1 }
  0xc1   : > { %462 = vst.msk [vmem:[#allocation2 + $0x30] sm:$0xff] %vm455_vm2, %v377_v32  ;;  %v773_v35 = vadd.f32 %v687_v24, %v493_v33  ;;  %1345 = vrot.lane.b32.xlu1 %v1246_v30, %s1829_s11 }
  0xc2   : > { %1279 = vst.msk [vmem:[%s2091_s10 + $0x20] sm:$0xff] %vm1276_vm3, %v1246_v30  ;;  %v836_v37 = vld [vmem:[#allocation2 + $0x20] sm:$0xff]  ;;  %1593 = vmatmul.msk.f32.gmra.mxu0 %vm241_vm1, %v2055_v52  ;;  %1660 = vmatmul.msk.f32.gmra.mxu1 %vm241_vm1, %v1901_v7 }
  0xc3   : > { %805 = vst.msk [vmem:[#allocation2 + $0x28] sm:$0xff] %vm455_vm2, %v773_v35  ;;  %v1116_v38 = vadd.f32 %v1028_v20, %v836_v37 }
  0xc4   : > { %1735 = vmatmul.msk.f32.gmra.mxu3 %vm241_vm1, %v1700_v34  ;;  %v1179_v39 = vld [vmem:[#allocation2 + $0x18] sm:$0xff]  ;;  %1727 = vmatmul.msk.f32.gmra.mxu2 %vm241_vm1, %v1923_v14 }
  0xc5   : > { %1148 = vst.msk [vmem:[#allocation2 + $0x20] sm:$0xff] %vm455_vm2, %v1116_v38  ;;  %v1215_v40 = vadd.f32 %v2071_v61, %v1179_v39 }
  0xc7   : > { %v449_v41 = vpop.f32.mrf.mxu3  ;;  %v1247_v42 = vmax.f32 %v1215_v40, 0.0  ;;  %v1034_v43 = vpop.f32.mrf.mxu2  ;;  %v515_v40 = vld [vmem:[#allocation2 + $0xd8] sm:$0xff] }
  0xc8   : > { %486 = vst.msk [vmem:[#allocation2 + $0xf0] sm:$0xff] %vm455_vm2, %v449_v41  ;;  %v380_v44 = vpop.f32.mrf.mxu0  ;;  %v494_v45 = vld [vmem:[#allocation2 + $0x30] sm:$0xff]  ;;  %v693_v7 = vpop.f32.mrf.mxu1 }
  0xc9   : > { %463 = vst.msk [vmem:[#allocation2 + $0x38] sm:$0xff] %vm455_vm2, %v380_v44  ;;  %v774_v47 = vadd.f32 %v690_v36, %v494_v45  ;;  %1347 = vrot.lane.b32.xlu1 %v1247_v42, %s1829_s11 }
  0xca   : > { %1280 = vst.msk [vmem:[%s2091_s10 + $0x28] sm:$0xff] %vm1276_vm3, %v1247_v42  ;;  %v837_v14 = vld [vmem:[#allocation2 + $0x28] sm:$0xff]  ;;  %1594 = vmatmul.msk.f32.gmra.mxu0 %vm241_vm1, %v2074_v62  ;;  %1661 = vmatmul.msk.f32.gmra.mxu1 %vm241_vm1, %v1913_v11 }
  0xcb   : > { %806 = vst.msk [vmem:[#allocation2 + $0x30] sm:$0xff] %vm455_vm2, %v774_v47  ;;  %v1117_v48 = vadd.f32 %v1031_v31, %v837_v14 }
  0xcc   : > { %1736 = vmatmul.msk.f32.gmra.mxu3 %vm241_vm1, %v1701_v46  ;;  %v1180_v49 = vld [vmem:[#allocation2 + $0x20] sm:$0xff]  ;;  %1728 = vmatmul.msk.f32.gmra.mxu2 %vm241_vm1, %v1932_v16 }
  0xcd   : > { %1149 = vst.msk [vmem:[#allocation2 + $0x28] sm:$0xff] %vm455_vm2, %v1117_v48  ;;  %v1216_v50 = vadd.f32 %v2071_v61, %v1180_v49 }
  0xcf   : > { %v452_v51 = vpop.f32.mrf.mxu3  ;;  %v1248_v52 = vmax.f32 %v1216_v50, 0.0  ;;  %v1037_v53 = vpop.f32.mrf.mxu2  ;;  %v516_v50 = vld [vmem:[#allocation2 + $0xe0] sm:$0xff] }
  0xd0   : > { %487 = vst.msk [vmem:[#allocation2 + $0xf8] sm:$0xff] %vm455_vm2, %v452_v51  ;;  %v383_v54 = vpop.f32.mrf.mxu0  ;;  %v495_v55 = vld [vmem:[#allocation2 + $0x38] sm:$0xff]  ;;  %v696_v11 = vpop.f32.mrf.mxu1 }
  0xd1   : > { %464 = vst.msk [vmem:[#allocation2 + $0x40] sm:$0xff] %vm455_vm2, %v383_v54  ;;  %v775_v56 = vadd.f32 %v693_v7, %v495_v55  ;;  %1349 = vrot.lane.b32.xlu2 %v1248_v52, %s1829_s11 }
  0xd2   : > { %1281 = vst.msk [vmem:[%s2091_s10 + $0x40] sm:$0xff] %vm1276_vm3, %v1248_v52  ;;  %v838_v16 = vld [vmem:[#allocation2 + $0x30] sm:$0xff] }
  0xd3   : > { %807 = vst.msk [vmem:[#allocation2 + $0x38] sm:$0xff] %vm455_vm2, %v775_v56  ;;  %v1118_v57 = vadd.f32 %v1034_v43, %v838_v16 }
  0xd4   : > { %v1181_v58 = vld [vmem:[#allocation2 + $0x28] sm:$0xff] }
  0xd5   : > { %1150 = vst.msk [vmem:[#allocation2 + $0x30] sm:$0xff] %vm455_vm2, %v1118_v57  ;;  %v1217_v59 = vadd.f32 %v2071_v61, %v1181_v58 }
  0xd7   : > { %v744_v62 = vpop.f32.mrf.mxu3  ;;  %v1249_v0 = vmax.f32 %v1217_v59, 0.0  ;;  %v1040_v1 = vpop.f32.mrf.mxu2 }
  0xd8   : > { %v792_v63 = vadd.f32 %v744_v62, %v512_v60  ;;  %v386_v2 = vpop.f32.mrf.mxu0  ;;  %v496_v3 = vld [vmem:[#allocation2 + $0x40] sm:$0xff]  ;;  %v699_v5 = vpop.f32.mrf.mxu1  ;;  %v517_v62 = vld [vmem:[#allocation2 + $0xe8] sm:$0xff] }
  0xd9   : > { %v776_v4 = vadd.f32 %v696_v11, %v496_v3  ;;  %1351 = vrot.lane.b32.xlu2 %v1249_v0, %s1829_s11  ;;  %465 = vst.msk [vmem:[#allocation2 + $0x48] sm:$0xff] %vm455_vm2, %v386_v2 }
  0xda   : > { %824 = vst.msk [vmem:[#allocation2 + $0xc0] sm:$0xff] %vm455_vm2, %v792_v63  ;;  %v839_v6 = vld [vmem:[#allocation2 + $0x38] sm:$0xff] }
  0xdb   : > { %808 = vst.msk [vmem:[#allocation2 + $0x40] sm:$0xff] %vm455_vm2, %v776_v4  ;;  %v1119_v8 = vadd.f32 %v1037_v53, %v839_v6 }
  0xdc   : > { %1282 = vst.msk [vmem:[%s2091_s10 + $0x48] sm:$0xff] %vm1276_vm3, %v1249_v0  ;;  %v1182_v9 = vld [vmem:[#allocation2 + $0x30] sm:$0xff] }
  0xdd   : > { %1151 = vst.msk [vmem:[#allocation2 + $0x38] sm:$0xff] %vm455_vm2, %v1119_v8  ;;  %v1218_v10 = vadd.f32 %v2071_v61, %v1182_v9 }
  0xdf   : > { %v747_v13 = vpop.f32.mrf.mxu3  ;;  %v1250_v17 = vmax.f32 %v1218_v10, 0.0  ;;  %v1043_v18 = vpop.f32.mrf.mxu2 }
  0xe0   : > { %v793_v15 = vadd.f32 %v747_v13, %v513_v12  ;;  %v389_v19 = vpop.f32.mrf.mxu0  ;;  %v497_v20 = vld [vmem:[#allocation2 + $0x48] sm:$0xff]  ;;  %v702_v21 = vpop.f32.mrf.mxu1  ;;  %v518_v13 = vld [vmem:[#allocation2 + $0xf0] sm:$0xff] }
  0xe1   : > { %1353 = vrot.lane.b32.xlu0 %v1250_v17, %s1829_s11  ;;  %466 = vst.msk [vmem:[#allocation2 + $0x50] sm:$0xff] %vm455_vm2, %v389_v19  ;;  %v777_v22 = vadd.f32 %v699_v5, %v497_v20 }
  0xe2   : > { %825 = vst.msk [vmem:[#allocation2 + $0xc8] sm:$0xff] %vm455_vm2, %v793_v15  ;;  %v840_v23 = vld [vmem:[#allocation2 + $0x40] sm:$0xff] }
  0xe3   : > { %1283 = vst.msk [vmem:[%s2091_s10 + $0x60] sm:$0xff] %vm1276_vm3, %v1250_v17  ;;  %v1120_v24 = vadd.f32 %v1040_v1, %v840_v23 }
  0xe4   : > { %809 = vst.msk [vmem:[#allocation2 + $0x48] sm:$0xff] %vm455_vm2, %v777_v22  ;;  %v1183_v25 = vld [vmem:[#allocation2 + $0x38] sm:$0xff] }
  0xe5   : > { %1152 = vst.msk [vmem:[#allocation2 + $0x40] sm:$0xff] %vm455_vm2, %v1120_v24  ;;  %v1219_v26 = vadd.f32 %v2071_v61, %v1183_v25 }
  0xe7   : > { %v750_v28 = vpop.f32.mrf.mxu3  ;;  %v1251_v30 = vmax.f32 %v1219_v26, 0.0  ;;  %v1046_v31 = vpop.f32.mrf.mxu2 }
  0xe8   : > { %v794_v29 = vadd.f32 %v750_v28, %v514_v27  ;;  %v392_v32 = vpop.f32.mrf.mxu0  ;;  %v498_v33 = vld [vmem:[#allocation2 + $0x50] sm:$0xff]  ;;  %v705_v34 = vpop.f32.mrf.mxu1  ;;  %v519_v28 = vld [vmem:[#allocation2 + $0xf8] sm:$0xff] }
  0xe9   : > { %1355 = vrot.lane.b32.xlu1 %v1251_v30, %s1829_s11  ;;  %467 = vst.msk [vmem:[#allocation2 + $0x58] sm:$0xff] %vm455_vm2, %v392_v32  ;;  %v778_v35 = vadd.f32 %v702_v21, %v498_v33 }
  0xea   : > { %826 = vst.msk [vmem:[#allocation2 + $0xd0] sm:$0xff] %vm455_vm2, %v794_v29 }
  0xeb   : > { %1284 = vst.msk [vmem:[%s2091_s10 + $0x68] sm:$0xff] %vm1276_vm3, %v1251_v30  ;;  %v841_v36 = vld [vmem:[#allocation2 + $0x48] sm:$0xff] }
  0xec   : > { %810 = vst.msk [vmem:[#allocation2 + $0x50] sm:$0xff] %vm455_vm2, %v778_v35  ;;  %v1121_v37 = vadd.f32 %v1043_v18, %v841_v36  ;;  %v1184_v38 = vld [vmem:[#allocation2 + $0x40] sm:$0xff] }
  0xed   : > { %v1220_v39 = vadd.f32 %v2071_v61, %v1184_v38 }
  0xee   : > { %1153 = vst.msk [vmem:[#allocation2 + $0x48] sm:$0xff] %vm455_vm2, %v1121_v37 }
  0xef   : > { %v753_v41 = vpop.f32.mrf.mxu3  ;;  %v1252_v43 = vmax.f32 %v1220_v39, 0.0  ;;  %v1049_v44 = vpop.f32.mrf.mxu2 }
  0xf0   : > { %v795_v42 = vadd.f32 %v753_v41, %v515_v40  ;;  %v395_v45 = vpop.f32.mrf.mxu0  ;;  %v499_v46 = vld [vmem:[#allocation2 + $0x58] sm:$0xff]  ;;  %v708_v47 = vpop.f32.mrf.mxu1  ;;  %v856_v41 = vld [vmem:[#allocation2 + $0xc0] sm:$0xff] }
  0xf1   : > { %1357 = vrot.lane.b32.xlu2 %v1252_v43, %s1829_s11  ;;  %468 = vst.msk [vmem:[#allocation2 + $0x60] sm:$0xff] %vm455_vm2, %v395_v45  ;;  %v779_v7 = vadd.f32 %v705_v34, %v499_v46 }
  0xf2   : > { %827 = vst.msk [vmem:[#allocation2 + $0xd8] sm:$0xff] %vm455_vm2, %v795_v42 }
  0xf3   : > { %1285 = vst.msk [vmem:[%s2091_s10 + $0x80] sm:$0xff] %vm1276_vm3, %v1252_v43  ;;  %v842_v14 = vld [vmem:[#allocation2 + $0x50] sm:$0xff] }
  0xf4   : > { %811 = vst.msk [vmem:[#allocation2 + $0x58] sm:$0xff] %vm455_vm2, %v779_v7  ;;  %v1122_v48 = vadd.f32 %v1046_v31, %v842_v14 }
  0xf5   : > { %v1185_v49 = vld [vmem:[#allocation2 + $0x48] sm:$0xff] }
  0xf6   : > { %1154 = vst.msk [vmem:[#allocation2 + $0x50] sm:$0xff] %vm455_vm2, %v1122_v48  ;;  %v1221_v52 = vadd.f32 %v2071_v61, %v1185_v49 }
  0xf7   : > { %v756_v51 = vpop.f32.mrf.mxu3  ;;  %v1052_v54 = vpop.f32.mrf.mxu2 }
  0xf8   : > { %v796_v53 = vadd.f32 %v756_v51, %v516_v50  ;;  %v398_v55 = vpop.f32.mrf.mxu0  ;;  %v1253_v56 = vmax.f32 %v1221_v52, 0.0  ;;  %v500_v11 = vld [vmem:[#allocation2 + $0x60] sm:$0xff]  ;;  %v711_v16 = vpop.f32.mrf.mxu1  ;;  %v857_v52 = vld [vmem:[#allocation2 + $0xc8] sm:$0xff] }
  0xf9   : > { %469 = vst.msk [vmem:[#allocation2 + $0x68] sm:$0xff] %vm455_vm2, %v398_v55  ;;  %v780_v57 = vadd.f32 %v708_v47, %v500_v11 }
  0xfa   : > { %828 = vst.msk [vmem:[#allocation2 + $0xe0] sm:$0xff] %vm455_vm2, %v796_v53  ;;  %1359 = vrot.lane.b32.xlu0 %v1253_v56, %s1829_s11 }
  0xfb   : > { %1286 = vst.msk [vmem:[%s2091_s10 + $0x88] sm:$0xff] %vm1276_vm3, %v1253_v56  ;;  %v843_v58 = vld [vmem:[#allocation2 + $0x58] sm:$0xff] }
  0xfc   : > { %812 = vst.msk [vmem:[#allocation2 + $0x60] sm:$0xff] %vm455_vm2, %v780_v57  ;;  %v1123_v59 = vadd.f32 %v1049_v44, %v843_v58 }
  0xfd   : > { %v1186_v60 = vld [vmem:[#allocation2 + $0x50] sm:$0xff] }
  0xfe   : > { %1155 = vst.msk [vmem:[#allocation2 + $0x58] sm:$0xff] %vm455_vm2, %v1123_v59  ;;  %v1222_v0 = vadd.f32 %v2071_v61, %v1186_v60 }
  0xff   : > { %v759_v63 = vpop.f32.mrf.mxu3  ;;  %v1055_v2 = vpop.f32.mrf.mxu2 }
 0x100   : > { %v797_v1 = vadd.f32 %v759_v63, %v517_v62  ;;  %v401_v3 = vpop.f32.mrf.mxu0  ;;  %v1254_v4 = vmax.f32 %v1222_v0, 0.0  ;;  %v501_v5 = vld [vmem:[#allocation2 + $0x68] sm:$0xff]  ;;  %v714_v6 = vpop.f32.mrf.mxu1 }
 0x101   : > { %470 = vst.msk [vmem:[#allocation2 + $0x70] sm:$0xff] %vm455_vm2, %v401_v3  ;;  %v781_v8 = vadd.f32 %v711_v16, %v501_v5 }
 0x102   : > { %829 = vst.msk [vmem:[#allocation2 + $0xe8] sm:$0xff] %vm455_vm2, %v797_v1  ;;  %1361 = vrot.lane.b32.xlu1 %v1254_v4, %s1829_s11 }
 0x103   : > { %1287 = vst.msk [vmem:[%s2091_s10 + $0xa0] sm:$0xff] %vm1276_vm3, %v1254_v4  ;;  %v844_v9 = vld [vmem:[#allocation2 + $0x60] sm:$0xff]  ;;  %v858_v4 = vld [vmem:[#allocation2 + $0xd0] sm:$0xff] }
 0x104   : > { %813 = vst.msk [vmem:[#allocation2 + $0x68] sm:$0xff] %vm455_vm2, %v781_v8  ;;  %v1124_v10 = vadd.f32 %v1052_v54, %v844_v9 }
 0x105   : > { %v1187_v12 = vld [vmem:[#allocation2 + $0x58] sm:$0xff] }
 0x106   : > { %1156 = vst.msk [vmem:[#allocation2 + $0x60] sm:$0xff] %vm455_vm2, %v1124_v10  ;;  %v1223_v17 = vadd.f32 %v2071_v61, %v1187_v12 }
 0x107   : > { %v762_v15 = vpop.f32.mrf.mxu3  ;;  %v1058_v19 = vpop.f32.mrf.mxu2 }
 0x108   : > { %v798_v18 = vadd.f32 %v762_v15, %v518_v13  ;;  %v404_v20 = vpop.f32.mrf.mxu0  ;;  %v1255_v21 = vmax.f32 %v1223_v17, 0.0  ;;  %v502_v22 = vld [vmem:[#allocation2 + $0x70] sm:$0xff]  ;;  %v717_v23 = vpop.f32.mrf.mxu1 }
 0x109   : > { %471 = vst.msk [vmem:[#allocation2 + $0x78] sm:$0xff] %vm455_vm2, %v404_v20  ;;  %v782_v24 = vadd.f32 %v714_v6, %v502_v22 }
 0x10a   : > { %830 = vst.msk [vmem:[#allocation2 + $0xf0] sm:$0xff] %vm455_vm2, %v798_v18  ;;  %1363 = vrot.lane.b32.xlu2 %v1255_v21, %s1829_s11 }
 0x10b   : > { %1288 = vst.msk [vmem:[%s2091_s10 + $0xa8] sm:$0xff] %vm1276_vm3, %v1255_v21  ;;  %v845_v25 = vld [vmem:[#allocation2 + $0x68] sm:$0xff] }
 0x10c   : > { %814 = vst.msk [vmem:[#allocation2 + $0x70] sm:$0xff] %vm455_vm2, %v782_v24  ;;  %v1125_v26 = vadd.f32 %v1055_v2, %v845_v25 }
 0x10d   : > { %v1188_v27 = vld [vmem:[#allocation2 + $0x60] sm:$0xff] }
 0x10e   : > { %1157 = vst.msk [vmem:[#allocation2 + $0x68] sm:$0xff] %vm455_vm2, %v1125_v26  ;;  %v1224_v30 = vadd.f32 %v2071_v61, %v1188_v27  ;;  %v859_v26 = vld [vmem:[#allocation2 + $0xd8] sm:$0xff] }
 0x10f   : > { %v765_v29 = vpop.f32.mrf.mxu3  ;;  %v1061_v32 = vpop.f32.mrf.mxu2 }
 0x110   : > { %v799_v31 = vadd.f32 %v765_v29, %v519_v28  ;;  %v407_v33 = vpop.f32.mrf.mxu0  ;;  %v1256_v34 = vmax.f32 %v1224_v30, 0.0  ;;  %v503_v35 = vld [vmem:[#allocation2 + $0x78] sm:$0xff]  ;;  %v720_v36 = vpop.f32.mrf.mxu1 }
 0x111   : > { %472 = vst.msk [vmem:[#allocation2 + $0x80] sm:$0xff] %vm455_vm2, %v407_v33  ;;  %v783_v37 = vadd.f32 %v717_v23, %v503_v35 }
 0x112   : > { %831 = vst.msk [vmem:[#allocation2 + $0xf8] sm:$0xff] %vm455_vm2, %v799_v31  ;;  %1365 = vrot.lane.b32.xlu0 %v1256_v34, %s1829_s11 }
 0x113   : > { %1289 = vst.msk [vmem:[%s2091_s10 + $0xc0] sm:$0xff] %vm1276_vm3, %v1256_v34  ;;  %v846_v38 = vld [vmem:[#allocation2 + $0x70] sm:$0xff] }
 0x114   : > { %815 = vst.msk [vmem:[#allocation2 + $0x78] sm:$0xff] %vm455_vm2, %v783_v37  ;;  %v1126_v39 = vadd.f32 %v1058_v19, %v846_v38 }
 0x115   : > { %v1189_v40 = vld [vmem:[#allocation2 + $0x68] sm:$0xff] }
 0x116   : > { %1158 = vst.msk [vmem:[#allocation2 + $0x70] sm:$0xff] %vm455_vm2, %v1126_v39  ;;  %v1225_v43 = vadd.f32 %v2071_v61, %v1189_v40 }
 0x117   : > { %v1088_v42 = vpop.f32.mrf.mxu3  ;;  %v1064_v45 = vpop.f32.mrf.mxu2 }
 0x118   : > { %v1136_v44 = vadd.f32 %v1088_v42, %v856_v41  ;;  %v410_v46 = vpop.f32.mrf.mxu0  ;;  %v1257_v47 = vmax.f32 %v1225_v43, 0.0  ;;  %v504_v7 = vld [vmem:[#allocation2 + $0x80] sm:$0xff]  ;;  %v723_v14 = vpop.f32.mrf.mxu1 }
 0x119   : > { %473 = vst.msk [vmem:[#allocation2 + $0x88] sm:$0xff] %vm455_vm2, %v410_v46  ;;  %v784_v48 = vadd.f32 %v720_v36, %v504_v7 }
 0x11a   : > { %1168 = vst.msk [vmem:[#allocation2 + $0xc0] sm:$0xff] %vm455_vm2, %v1136_v44  ;;  %1367 = vrot.lane.b32.xlu1 %v1257_v47, %s1829_s11  ;;  %v860_v44 = vld [vmem:[#allocation2 + $0xe0] sm:$0xff] }
 0x11b   : > { %1290 = vst.msk [vmem:[%s2091_s10 + $0xc8] sm:$0xff] %vm1276_vm3, %v1257_v47  ;;  %v847_v49 = vld [vmem:[#allocation2 + $0x78] sm:$0xff] }
 0x11c   : > { %816 = vst.msk [vmem:[#allocation2 + $0x80] sm:$0xff] %vm455_vm2, %v784_v48  ;;  %v1127_v50 = vadd.f32 %v1061_v32, %v847_v49 }
 0x11d   : > { %v1190_v51 = vld [vmem:[#allocation2 + $0x70] sm:$0xff] }
 0x11e   : > { %1159 = vst.msk [vmem:[#allocation2 + $0x78] sm:$0xff] %vm455_vm2, %v1127_v50  ;;  %v1226_v54 = vadd.f32 %v2071_v61, %v1190_v51 }
 0x11f   : > { %v1091_v53 = vpop.f32.mrf.mxu3  ;;  %v1067_v56 = vpop.f32.mrf.mxu2 }
 0x120   : > { %v1137_v55 = vadd.f32 %v1091_v53, %v857_v52  ;;  %v413_v11 = vpop.f32.mrf.mxu0  ;;  %v1258_v16 = vmax.f32 %v1226_v54, 0.0  ;;  %v505_v58 = vld [vmem:[#allocation2 + $0x88] sm:$0xff]  ;;  %v726_v60 = vpop.f32.mrf.mxu1 }
 0x121   : > { %v1200_v57 = vld [vmem:[#allocation2 + $0xc0] sm:$0xff]  ;;  %474 = vst.msk [vmem:[#allocation2 + $0x90] sm:$0xff] %vm455_vm2, %v413_v11  ;;  %v785_v62 = vadd.f32 %v723_v14, %v505_v58 }
 0x122   : > { %1169 = vst.msk [vmem:[#allocation2 + $0xc8] sm:$0xff] %vm455_vm2, %v1137_v55  ;;  %v1236_v59 = vadd.f32 %v2071_v61, %v1200_v57  ;;  %1369 = vrot.lane.b32.xlu2 %v1258_v16, %s1829_s11  ;;  %v1342_v0 = vpop.permute.xlu0 %1341  ;;  %v861_v57 = vld [vmem:[#allocation2 + $0xe8] sm:$0xff] }
 0x123   : > { %1291 = vst.msk [vmem:[%s2091_s10 + $0xe0] sm:$0xff] %vm1276_vm3, %v1258_v16  ;;  %v848_v63 = vld [vmem:[#allocation2 + $0x80] sm:$0xff] }
 0x124   : > { %v1268_v1 = vmax.f32 %v1236_v59, 0.0  ;;  %817 = vst.msk [vmem:[#allocation2 + $0x88] sm:$0xff] %vm455_vm2, %v785_v62  ;;  %v1128_v2 = vadd.f32 %v1064_v45, %v848_v63 }
 0x125   : > { %1737 = vst.msk [vmem:[%s2091_s10 + $0x10] sm:$0xff] %vm1276_vm3, %v1342_v0  ;;  %v1191_v3 = vld [vmem:[#allocation2 + $0x78] sm:$0xff] }
 0x126   : > { %1389 = vrot.lane.b32.xlu0 %v1268_v1, %s1829_s11  ;;  %1160 = vst.msk [vmem:[#allocation2 + $0x80] sm:$0xff] %vm455_vm2, %v1128_v2  ;;  %v1227_v6 = vadd.f32 %v2071_v61, %v1191_v3 }
 0x127   : > { %v1094_v5 = vpop.f32.mrf.mxu3  ;;  %1301 = vst.msk [vmem:[%s2091_s10 + $0x180] sm:$0xff] %vm1276_vm3, %v1268_v1  ;;  %v1070_v9 = vpop.f32.mrf.mxu2 }
 0x128   : > { %v1138_v8 = vadd.f32 %v1094_v5, %v858_v4  ;;  %v416_v10 = vpop.f32.mrf.mxu0  ;;  %v1259_v13 = vmax.f32 %v1227_v6, 0.0  ;;  %v506_v15 = vld [vmem:[#allocation2 + $0x90] sm:$0xff]  ;;  %v729_v18 = vpop.f32.mrf.mxu1 }
 0x129   : > { %v1201_v12 = vld [vmem:[#allocation2 + $0xc8] sm:$0xff]  ;;  %475 = vst.msk [vmem:[#allocation2 + $0x98] sm:$0xff] %vm455_vm2, %v416_v10  ;;  %v786_v19 = vadd.f32 %v726_v60, %v506_v15 }
 0x12a   : > { %1170 = vst.msk [vmem:[#allocation2 + $0xd0] sm:$0xff] %vm455_vm2, %v1138_v8  ;;  %v1237_v17 = vadd.f32 %v2071_v61, %v1201_v12  ;;  %v862_v12 = vld [vmem:[#allocation2 + $0xf0] sm:$0xff] }
 0x12b   : > { %v849_v20 = vld [vmem:[#allocation2 + $0x88] sm:$0xff]  ;;  %v1344_v21 = vpop.permute.xlu0 %1343  ;;  %v1350_v22 = vpop.permute.xlu2 %1349  ;;  %1292 = vst.msk [vmem:[%s2091_s10 + $0xe8] sm:$0xff] %vm1276_vm3, %v1259_v13 }
 0x12c   : > { %v1269_v23 = vmax.f32 %v1237_v17, 0.0  ;;  %818 = vst.msk [vmem:[#allocation2 + $0x90] sm:$0xff] %vm455_vm2, %v786_v19  ;;  %v1129_v24 = vadd.f32 %v1067_v56, %v849_v20 }
 0x12d   : > { %1738 = vst.msk [vmem:[%s2091_s10 + $0x18] sm:$0xff] %vm1276_vm3, %v1344_v21  ;;  %v1192_v25 = vld [vmem:[#allocation2 + $0x80] sm:$0xff] }
 0x12e   : > { %1391 = vrot.lane.b32.xlu1 %v1269_v23, %s1829_s11  ;;  %1371 = vrot.lane.b32.xlu0 %v1259_v13, %s1829_s11  ;;  %1161 = vst.msk [vmem:[#allocation2 + $0x88] sm:$0xff] %vm455_vm2, %v1129_v24  ;;  %v1228_v28 = vadd.f32 %v2071_v61, %v1192_v25 }
 0x12f   : > { %v1097_v27 = vpop.f32.mrf.mxu3  ;;  %1741 = vst.msk [vmem:[%s2091_s10 + $0x50] sm:$0xff] %vm1276_vm3, %v1350_v22  ;;  %v1073_v33 = vpop.f32.mrf.mxu2 }
 0x130   : > { %v1139_v29 = vadd.f32 %v1097_v27, %v859_v26  ;;  %1302 = vst.msk [vmem:[%s2091_s10 + $0x188] sm:$0xff] %vm1276_vm3, %v1269_v23  ;;  %v419_v30 = vpop.f32.mrf.mxu0  ;;  %v1260_v32 = vmax.f32 %v1228_v28, 0.0  ;;  %v507_v34 = vld [vmem:[#allocation2 + $0x98] sm:$0xff]  ;;  %v732_v36 = vpop.f32.mrf.mxu1 }
 0x131   : > { %v1202_v31 = vld [vmem:[#allocation2 + $0xd0] sm:$0xff]  ;;  %476 = vst.msk [vmem:[#allocation2 + $0xa0] sm:$0xff] %vm455_vm2, %v419_v30  ;;  %v787_v37 = vadd.f32 %v729_v18, %v507_v34 }
 0x132   : > { %1171 = vst.msk [vmem:[#allocation2 + $0xd8] sm:$0xff] %vm455_vm2, %v1139_v29  ;;  %v1238_v35 = vadd.f32 %v2071_v61, %v1202_v31  ;;  %v863_v29 = vld [vmem:[#allocation2 + $0xf8] sm:$0xff] }
 0x133   : > { %v850_v38 = vld [vmem:[#allocation2 + $0x90] sm:$0xff]  ;;  %v1346_v39 = vpop.permute.xlu1 %1345  ;;  %1293 = vst.msk [vmem:[%s2091_s10 + $0x100] sm:$0xff] %vm1276_vm3, %v1260_v32  ;;  %v1352_v42 = vpop.permute.xlu2 %1351 }
 0x134   : > { %v1270_v40 = vmax.f32 %v1238_v35, 0.0  ;;  %819 = vst.msk [vmem:[#allocation2 + $0x98] sm:$0xff] %vm455_vm2, %v787_v37  ;;  %v1130_v41 = vadd.f32 %v1070_v9, %v850_v38 }
 0x135   : > { %1739 = vst.msk [vmem:[%s2091_s10 + $0x30] sm:$0xff] %vm1276_vm3, %v1346_v39  ;;  %v1193_v43 = vld [vmem:[#allocation2 + $0x88] sm:$0xff] }
 0x136   : > { %1393 = vrot.lane.b32.xlu2 %v1270_v40, %s1829_s11  ;;  %1373 = vrot.lane.b32.xlu1 %v1260_v32, %s1829_s11  ;;  %1162 = vst.msk [vmem:[#allocation2 + $0x90] sm:$0xff] %vm455_vm2, %v1130_v41  ;;  %v1229_v46 = vadd.f32 %v2071_v61, %v1193_v43 }
 0x137   : > { %v1100_v45 = vpop.f32.mrf.mxu3  ;;  %1742 = vst.msk [vmem:[%s2091_s10 + $0x58] sm:$0xff] %vm1276_vm3, %v1352_v42  ;;  %v1076_v52 = vpop.f32.mrf.mxu2 }
 0x138   : > { %v1140_v47 = vadd.f32 %v1100_v45, %v860_v44  ;;  %1303 = vst.msk [vmem:[%s2091_s10 + $0x1a0] sm:$0xff] %vm1276_vm3, %v1270_v40  ;;  %v422_v7 = vpop.f32.mrf.mxu0  ;;  %v1261_v48 = vmax.f32 %v1229_v46, 0.0  ;;  %v508_v49 = vld [vmem:[#allocation2 + $0xa0] sm:$0xff]  ;;  %v735_v56 = vpop.f32.mrf.mxu1 }
 0x139   : > { %v1203_v14 = vld [vmem:[#allocation2 + $0xd8] sm:$0xff]  ;;  %477 = vst.msk [vmem:[#allocation2 + $0xa8] sm:$0xff] %vm455_vm2, %v422_v7  ;;  %v788_v51 = vadd.f32 %v732_v36, %v508_v49 }
 0x13a   : > { %1172 = vst.msk [vmem:[#allocation2 + $0xe0] sm:$0xff] %vm455_vm2, %v1140_v47  ;;  %v1239_v50 = vadd.f32 %v2071_v61, %v1203_v14 }
 0x13b   : > { %v851_v53 = vld [vmem:[#allocation2 + $0x98] sm:$0xff]  ;;  %v1348_v54 = vpop.permute.xlu1 %1347  ;;  %1294 = vst.msk [vmem:[%s2091_s10 + $0x108] sm:$0xff] %vm1276_vm3, %v1261_v48 }
 0x13c   : > { %v1271_v55 = vmax.f32 %v1239_v50, 0.0  ;;  %820 = vst.msk [vmem:[#allocation2 + $0xa0] sm:$0xff] %vm455_vm2, %v788_v51  ;;  %v1131_v11 = vadd.f32 %v1073_v33, %v851_v53 }
 0x13d   : > { %1740 = vst.msk [vmem:[%s2091_s10 + $0x38] sm:$0xff] %vm1276_vm3, %v1348_v54  ;;  %v1194_v16 = vld [vmem:[#allocation2 + $0x90] sm:$0xff] }
 0x13e   : > { %1395 = vrot.lane.b32.xlu0 %v1271_v55, %s1829_s11  ;;  %1375 = vrot.lane.b32.xlu2 %v1261_v48, %s1829_s11  ;;  %1163 = vst.msk [vmem:[#allocation2 + $0x98] sm:$0xff] %vm455_vm2, %v1131_v11  ;;  %v1230_v59 = vadd.f32 %v2071_v61, %v1194_v16 }
 0x13f   : > { %v1103_v58 = vpop.f32.mrf.mxu3  ;;  %1304 = vst.msk [vmem:[%s2091_s10 + $0x1a8] sm:$0xff] %vm1276_vm3, %v1271_v55  ;;  %v1079_v9 = vpop.f32.mrf.mxu2 }
 0x140   : > { %v1141_v60 = vadd.f32 %v1103_v58, %v861_v57  ;;  %v425_v62 = vpop.f32.mrf.mxu0  ;;  %v1262_v0 = vmax.f32 %v1230_v59, 0.0  ;;  %v509_v1 = vld [vmem:[#allocation2 + $0xa8] sm:$0xff]  ;;  %v738_v8 = vpop.f32.mrf.mxu1 }
 0x141   : > { %v1204_v63 = vld [vmem:[#allocation2 + $0xe0] sm:$0xff]  ;;  %478 = vst.msk [vmem:[#allocation2 + $0xb0] sm:$0xff] %vm455_vm2, %v425_v62  ;;  %v789_v3 = vadd.f32 %v735_v56, %v509_v1 }
 0x142   : > { %1173 = vst.msk [vmem:[#allocation2 + $0xe8] sm:$0xff] %vm455_vm2, %v1141_v60  ;;  %v1240_v2 = vadd.f32 %v2071_v61, %v1204_v63 }
 0x143   : > { %v852_v4 = vld [vmem:[#allocation2 + $0xa0] sm:$0xff]  ;;  %1295 = vst.msk [vmem:[%s2091_s10 + $0x120] sm:$0xff] %vm1276_vm3, %v1262_v0 }
 0x144   : > { %v1272_v5 = vmax.f32 %v1240_v2, 0.0  ;;  %821 = vst.msk [vmem:[#allocation2 + $0xa8] sm:$0xff] %vm455_vm2, %v789_v3  ;;  %v1132_v6 = vadd.f32 %v1076_v52, %v852_v4 }
 0x145   : > { %v1195_v10 = vld [vmem:[#allocation2 + $0x98] sm:$0xff] }
 0x146   : > { %1305 = vst.msk [vmem:[%s2091_s10 + $0x1c0] sm:$0xff] %vm1276_vm3, %v1272_v5  ;;  %1397 = vrot.lane.b32.xlu1 %v1272_v5, %s1829_s11  ;;  %1377 = vrot.lane.b32.xlu0 %v1262_v0, %s1829_s11  ;;  %v1231_v15 = vadd.f32 %v2071_v61, %v1195_v10 }
 0x147   : > { %1164 = vst.msk [vmem:[#allocation2 + $0xa0] sm:$0xff] %vm455_vm2, %v1132_v6  ;;  %v1106_v13 = vpop.f32.mrf.mxu3  ;;  %v1082_v34 = vpop.f32.mrf.mxu2 }
 0x148   : > { %v1142_v17 = vadd.f32 %v1106_v13, %v862_v12  ;;  %v428_v18 = vpop.f32.mrf.mxu0  ;;  %v1263_v19 = vmax.f32 %v1231_v15, 0.0  ;;  %v510_v21 = vld [vmem:[#allocation2 + $0xb0] sm:$0xff]  ;;  %v741_v33 = vpop.f32.mrf.mxu1 }
 0x149   : > { %v1205_v20 = vld [vmem:[#allocation2 + $0xe8] sm:$0xff]  ;;  %479 = vst.msk [vmem:[#allocation2 + $0xb8] sm:$0xff] %vm455_vm2, %v428_v18  ;;  %v790_v23 = vadd.f32 %v738_v8, %v510_v21 }
 0x14a   : > { %1174 = vst.msk [vmem:[#allocation2 + $0xf0] sm:$0xff] %vm455_vm2, %v1142_v17  ;;  %v2310_v22 = vadd.f32 %v2071_v61, %v1205_v20 }
 0x14b   : > { %v853_v24 = vld [vmem:[#allocation2 + $0xa8] sm:$0xff]  ;;  %v1358_v25 = vpop.permute.xlu2 %1357  ;;  %1296 = vst.msk [vmem:[%s2091_s10 + $0x128] sm:$0xff] %vm1276_vm3, %v1263_v19 }
 0x14c   : > { %v1273_v26 = vmax.f32 %v2310_v22, 0.0  ;;  %822 = vst.msk [vmem:[#allocation2 + $0xb0] sm:$0xff] %vm455_vm2, %v790_v23  ;;  %v1133_v27 = vadd.f32 %v1079_v9, %v853_v24 }
 0x14d   : > { %1745 = vst.msk [vmem:[%s2091_s10 + $0x90] sm:$0xff] %vm1276_vm3, %v1358_v25 }
 0x14e   : > { %1379 = vrot.lane.b32.xlu1 %v1263_v19, %s1829_s11  ;;  %v1196_v28 = vld [vmem:[#allocation2 + $0xa0] sm:$0xff]  ;;  %1165 = vst.msk [vmem:[#allocation2 + $0xa8] sm:$0xff] %vm455_vm2, %v1133_v27 }
 0x14f   : > { %v1109_v30 = vpop.f32.mrf.mxu3  ;;  %v1232_v31 = vadd.f32 %v2071_v61, %v1196_v28  ;;  %1306 = vst.msk [vmem:[%s2091_s10 + $0x1c8] sm:$0xff] %vm1276_vm3, %v1273_v26  ;;  %v1085_v7 = vpop.f32.mrf.mxu2 }
 0x150   : > { %v1143_v32 = vadd.f32 %v1109_v30, %v863_v29  ;;  %v511_v37 = vld [vmem:[#allocation2 + $0xb8] sm:$0xff] }
 0x151   : > { %v1264_v35 = vmax.f32 %v1232_v31, 0.0  ;;  %v1206_v36 = vld [vmem:[#allocation2 + $0xf0] sm:$0xff]  ;;  %v791_v39 = vadd.f32 %v741_v33, %v511_v37 }
 0x152   : > { %1175 = vst.msk [vmem:[#allocation2 + $0xf8] sm:$0xff] %vm455_vm2, %v1143_v32  ;;  %v1242_v38 = vadd.f32 %v2071_v61, %v1206_v36 }
 0x153   : > { %1381 = vrot.lane.b32.xlu2 %v1264_v35, %s1829_s11  ;;  %1297 = vst.msk [vmem:[%s2091_s10 + $0x140] sm:$0xff] %vm1276_vm3, %v1264_v35  ;;  %v854_v40 = vld [vmem:[#allocation2 + $0xb0] sm:$0xff]  ;;  %v1354_v41 = vpop.permute.xlu0 %1353 }
 0x154   : > { %v1274_v42 = vmax.f32 %v1242_v38, 0.0  ;;  %823 = vst.msk [vmem:[#allocation2 + $0xb8] sm:$0xff] %vm455_vm2, %v791_v39  ;;  %v1134_v43 = vadd.f32 %v1082_v34, %v854_v40 }
 0x155   : > { %1743 = vst.msk [vmem:[%s2091_s10 + $0x70] sm:$0xff] %vm1276_vm3, %v1354_v41  ;;  %v1197_v44 = vld [vmem:[#allocation2 + $0xa8] sm:$0xff] }
 0x156   : > { %1166 = vst.msk [vmem:[#allocation2 + $0xb0] sm:$0xff] %vm455_vm2, %v1134_v43  ;;  %v1233_v45 = vadd.f32 %v2071_v61, %v1197_v44 }
 0x157   : > { %1307 = vst.msk [vmem:[%s2091_s10 + $0x1e0] sm:$0xff] %vm1276_vm3, %v1274_v42 }
 0x158   : > { %v1265_v46 = vmax.f32 %v1233_v45, 0.0 }
 0x159   : > { %v1207_v47 = vld [vmem:[#allocation2 + $0xf8] sm:$0xff] }
 0x15a   : > { %v1243_v14 = vadd.f32 %v2071_v61, %v1207_v47  ;;  %1383 = vrot.lane.b32.xlu0 %v1265_v46, %s1829_s11  ;;  %1298 = vst.msk [vmem:[%s2091_s10 + $0x148] sm:$0xff] %vm1276_vm3, %v1265_v46 }
 0x15b   : > { %v855_v48 = vld [vmem:[#allocation2 + $0xb8] sm:$0xff]  ;;  %v1356_v49 = vpop.permute.xlu1 %1355 }
 0x15c   : > { %v1275_v50 = vmax.f32 %v1243_v14, 0.0  ;;  %v1135_v51 = vadd.f32 %v1085_v7, %v855_v48  ;;  %1744 = vst.msk [vmem:[%s2091_s10 + $0x78] sm:$0xff] %vm1276_vm3, %v1356_v49 }
 0x15d   : > { %v1198_v52 = vld [vmem:[#allocation2 + $0xb0] sm:$0xff] }
 0x15e   : > { %1308 = vst.msk [vmem:[%s2091_s10 + $0x1e8] sm:$0xff] %vm1276_vm3, %v1275_v50  ;;  %v1234_v53 = vadd.f32 %v2071_v61, %v1198_v52 }
 0x15f   : > { %1167 = vst.msk [vmem:[#allocation2 + $0xb8] sm:$0xff] %vm455_vm2, %v1135_v51 }
 0x160   : > { %v1266_v54 = vmax.f32 %v1234_v53, 0.0 }
 0x162   : > { %1401 = vrot.lane.b32.xlu0 %v1274_v42, %s1829_s11  ;;  %1385 = vrot.lane.b32.xlu1 %v1266_v54, %s1829_s11  ;;  %1299 = vst.msk [vmem:[%s2091_s10 + $0x160] sm:$0xff] %vm1276_vm3, %v1266_v54 }
 0x164   : > { %v1364_v55 = vpop.permute.xlu2 %1363 }
 0x165   : > { %1748 = vst.msk [vmem:[%s2091_s10 + $0xb8] sm:$0xff] %vm1276_vm3, %v1364_v55 }
 0x166   : > { %v1199_v56 = vld [vmem:[#allocation2 + $0xb8] sm:$0xff] }
 0x167   : > { %v1235_v11 = vadd.f32 %v2071_v61, %v1199_v56 }
 0x169   : > { %v1267_v16 = vmax.f32 %v1235_v11, 0.0 }
 0x16a   : > { %1403 = vrot.lane.b32.xlu1 %v1275_v50, %s1829_s11 }
 0x16b   : > { %1387 = vrot.lane.b32.xlu2 %v1267_v16, %s1829_s11  ;;  %1300 = vst.msk [vmem:[%s2091_s10 + $0x168] sm:$0xff] %vm1276_vm3, %v1267_v16 }
 0x16c   : > { %v1360_v57 = vpop.permute.xlu0 %1359 }
 0x16d   : > { %1746 = vst.msk [vmem:[%s2091_s10 + $0x98] sm:$0xff] %vm1276_vm3, %v1360_v57 }
 0x173   : > { %1399 = vrot.lane.b32.xlu2 %v1273_v26, %s1829_s11 }
 0x174   : > { %v1362_v58 = vpop.permute.xlu1 %1361 }
 0x175   : > { %1747 = vst.msk [vmem:[%s2091_s10 + $0xb0] sm:$0xff] %vm1276_vm3, %v1362_v58 }
 0x17c   : > { %v1370_v61 = vpop.permute.xlu2 %1369 }
 0x17d   : > { %1751 = vst.msk [vmem:[%s2091_s10 + $0xf0] sm:$0xff] %vm1276_vm3, %v1370_v61 }
 0x184   : > { %v1366_v59 = vpop.permute.xlu0 %1365 }
 0x185   : > { %1749 = vst.msk [vmem:[%s2091_s10 + $0xd0] sm:$0xff] %vm1276_vm3, %v1366_v59 }
 0x18c   : > { %v1368_v60 = vpop.permute.xlu1 %1367 }
 0x18d   : > { %1750 = vst.msk [vmem:[%s2091_s10 + $0xd8] sm:$0xff] %vm1276_vm3, %v1368_v60 }
 0x190   : > { %v1394_v62 = vpop.permute.xlu2 %1393 }
 0x191   : > { %1763 = vst.msk [vmem:[%s2091_s10 + $0x1b0] sm:$0xff] %vm1276_vm3, %v1394_v62 }
 0x198   : > { %v1390_v63 = vpop.permute.xlu0 %1389  ;;  %v1376_v0 = vpop.permute.xlu2 %1375 }
 0x199   : > { %1761 = vst.msk [vmem:[%s2091_s10 + $0x190] sm:$0xff] %vm1276_vm3, %v1390_v63 }
 0x19a   : > { %1754 = vst.msk [vmem:[%s2091_s10 + $0x118] sm:$0xff] %vm1276_vm3, %v1376_v0 }
 0x1a0   : > { %v1392_v1 = vpop.permute.xlu1 %1391  ;;  %v1372_v2 = vpop.permute.xlu0 %1371 }
 0x1a1   : > { %1762 = vst.msk [vmem:[%s2091_s10 + $0x198] sm:$0xff] %vm1276_vm3, %v1392_v1 }
 0x1a2   : > { %1752 = vst.msk [vmem:[%s2091_s10 + $0xf8] sm:$0xff] %vm1276_vm3, %v1372_v2 }
 0x1a8   : > { %v1374_v3 = vpop.permute.xlu1 %1373 }
 0x1a9   : > { %1753 = vst.msk [vmem:[%s2091_s10 + $0x110] sm:$0xff] %vm1276_vm3, %v1374_v3 }
 0x1ad   : > { %v1382_v4 = vpop.permute.xlu2 %1381 }
 0x1ae   : > { %1757 = vst.msk [vmem:[%s2091_s10 + $0x150] sm:$0xff] %vm1276_vm3, %v1382_v4 }
 0x1b0   : > { %v1396_v5 = vpop.permute.xlu0 %1395 }
 0x1b1   : > { %1764 = vst.msk [vmem:[%s2091_s10 + $0x1b8] sm:$0xff] %vm1276_vm3, %v1396_v5 }
 0x1b8   : > { %v1398_v6 = vpop.permute.xlu1 %1397  ;;  %v1378_v8 = vpop.permute.xlu0 %1377 }
 0x1b9   : > { %1765 = vst.msk [vmem:[%s2091_s10 + $0x1d0] sm:$0xff] %vm1276_vm3, %v1398_v6 }
 0x1ba   : > { %1755 = vst.msk [vmem:[%s2091_s10 + $0x130] sm:$0xff] %vm1276_vm3, %v1378_v8 }
 0x1c0   : > { %v1380_v9 = vpop.permute.xlu1 %1379 }
 0x1c1   : > { %1756 = vst.msk [vmem:[%s2091_s10 + $0x138] sm:$0xff] %vm1276_vm3, %v1380_v9 }
 0x1c5   : > { %v1388_v10 = vpop.permute.xlu2 %1387 }
 0x1c6   : > { %1760 = vst.msk [vmem:[%s2091_s10 + $0x178] sm:$0xff] %vm1276_vm3, %v1388_v10 }
 0x1cc   : > { %v1384_v12 = vpop.permute.xlu0 %1383 }
 0x1cd   : > { %v1400_v13 = vpop.permute.xlu2 %1399  ;;  %1758 = vst.msk [vmem:[%s2091_s10 + $0x158] sm:$0xff] %vm1276_vm3, %v1384_v12 }
 0x1ce   : > { %1766 = vst.msk [vmem:[%s2091_s10 + $0x1d8] sm:$0xff] %vm1276_vm3, %v1400_v13 }
 0x1d4   : > { %v1402_v15 = vpop.permute.xlu0 %1401  ;;  %v1386_v17 = vpop.permute.xlu1 %1385 }
 0x1d5   : > { %1767 = vst.msk [vmem:[%s2091_s10 + $0x1f0] sm:$0xff] %vm1276_vm3, %v1402_v15 }
 0x1d6   : > { %1759 = vst.msk [vmem:[%s2091_s10 + $0x170] sm:$0xff] %vm1276_vm3, %v1386_v17 }
 0x1dc   : > { %v1404_v18 = vpop.permute.xlu1 %1403 }
 0x1dd   : > { %1768 = vst.msk [vmem:[%s2091_s10 + $0x1f8] sm:$0xff] %vm1276_vm3, %v1404_v18 }
 0x1de PF: > { %s13_s14 = sadd.s32 1, %s1827_s14   ;;  %s2415_s12 = smov %s1823_s13 }
 0x1df   : > { %p10_p5 = scmp.ge.s32.totalorder %s13_s14, 4   ;;  %s2416_s13 = smov %s2418_s15 }
 0x1e1   :  { %12 = sbr.rel (!%p10_p5) target bundleno = 2 (0x2), region = 67 }

</bundles_post_ra>
